<compile_context>
chip_gen: v6e
topology: v6e:2x2x1
jax: 0.10.0
libtpu: 0.0.40
codegen_flags: <defaults>
</compile_context>

<pallas_src>
import functools

import jax
import jax.numpy as jnp
from jax import lax
from jax.experimental import pallas as pl
from jax.experimental.pallas import tpu as pltpu


def _round_up(v, m):
    return (v + m - 1) // m * m


def _shift_down(a, j, axis):
    """out[..., i, ...] = a[..., i + j, ...].  pltpu.roll follows the np.roll
    convention (positive shift moves element i -> i + shift), so a shift toward
    lower indices is a rotate by (n - j).  The trailing j positions wrap
    (garbage) and are never read thanks to the valid-extent bookkeeping."""
    n = a.shape[axis]
    return pltpu.roll(a, (n - j) % n, axis)


def _axis_pool(a, k, axis, op):
    """Sliding min/max over width-k windows along `axis` (van Herk doubling,
    O(log k) rolls); out[i] is valid for i <= size - k, trailing are garbage."""
    if k <= 1:
        return a
    acc, w = a, 1
    while 2 * w <= k:
        acc = op(acc, _shift_down(acc, w, axis))
        w *= 2
    if w < k:                       # overlapping combine OK: min/max idempotent
        acc = op(acc, _shift_down(acc, k - w, axis))
    return acc


def _pool2d(a, k, op):
    a = _axis_pool(a, k, 1, op)     # lane axis (W)
    a = _axis_pool(a, k, 0, op)     # sublane axis (H)
    return a


def _axis_window_sum(a, k, axis):
    """Exact width-k sliding-window sum along `axis` via binary decomposition
    of k (disjoint-segment combines; ~log2(k)+popcount(k) shift+adds).
    out[i] = sum_{j<k} a[i+j]; valid for i <= size - k, trailing are garbage."""
    if k <= 1:
        return a
    acc = None          # running sum of the first `off` elements of the window
    off = 0
    pw, w = a, 1        # pw[i] = sum of a[i .. i + w)
    rem = k
    while True:
        if rem & 1:
            if acc is None:
                acc, off = pw, w
            else:
                acc = acc + _shift_down(pw, off, axis)
                off += w
        rem >>= 1
        if not rem:
            break
        pw = pw + _shift_down(pw, w, axis)
        w *= 2
    return acc


def _postproc_kernel(x_hbm, o_hbm, xbuf, obuf, *, H, W, P, k, n_iters,
                     threshold, eps, Ho, Wo):
    # Single-buffered manual ingress (nothing to pipeline for a single block).
    pltpu.sync_copy(x_hbm, xbuf)
    x = xbuf[...].astype(jnp.float32)                       # (Hin, Win)
    Hin, Win = x.shape
    Hob, Wob = obuf.shape

    # --- Normalize: (x - mean) / (std + eps); torch.std is unbiased (n-1). ---
    rows = lax.broadcasted_iota(jnp.int32, (Hin, Win), 0)
    cols = lax.broadcasted_iota(jnp.int32, (Hin, Win), 1)
    interior = (rows >= P) & (rows < P + H) & (cols >= P) & (cols < P + W)

    n = H * W
    mean = jnp.sum(jnp.where(interior, x, 0.0)) * (1.0 / n)
    d = jnp.where(interior, x - mean, 0.0)
    std = jnp.sqrt(jnp.sum(d * d) * (1.0 / (n - 1)))
    inv = 1.0 / (std + eps)                                 # scalar reciprocal
    # +inf on the P-wide erosion border (identity of min) and on the alignment
    # padding (never read by any valid output).  Reuses d (saves one vsub).
    x = jnp.where(interior, d * inv, jnp.inf)
    # rows/cols/interior are dead from here on -> not live across the pools.

    # --- Morphological opening ---
    # Erosion: n_iters VALID k x k min-pools on the +inf pre-padded image
    # (equivalent to the reference's iterated pad-1 MaxPool2d of -x).
    for _ in range(n_iters):
        x = _pool2d(x, k, jnp.minimum)
    # Dilation: n_iters VALID k x k max-pools.
    for _ in range(n_iters):
        x = _pool2d(x, k, jnp.maximum)

    # --- Blur: AvgPool2d(k, stride=1) as separable shift-add window sums. ---
    # Valid outputs live at [0, Ho) x [0, Wo) and only ever read finite data;
    # the +inf / wrap garbage beyond the valid extent never feeds them, and the
    # output crop mask below keeps it out of the stored block.
    x = _axis_window_sum(x, k, 1)
    x = _axis_window_sum(x, k, 0)
    y = x[:Hob, :Wob] * (1.0 / (k * k))          # tile-aligned (8,128) slice

    # --- Threshold(threshold, value=0) + zeroing of the alignment fringe. ---
    ro = lax.broadcasted_iota(jnp.int32, (Hob, Wob), 0)
    co = lax.broadcasted_iota(jnp.int32, (Hob, Wob), 1)
    keep = (ro < Ho) & (co < Wo) & (y > threshold)
    obuf[...] = jnp.where(keep, y, 0.0).astype(obuf.dtype)
    pltpu.sync_copy(obuf, o_hbm)                 # single-buffered egress


def _vmem_capacity_bytes():
    try:
        return int(pltpu.get_tpu_info().vmem_capacity_bytes)
    except Exception:
        return 128 * 1024 * 1024                 # v5e/v6e default


def post_processing(x, *, threshold=0.5, n_iters=2, k_size=10, eps=1e-10):
    C, H, W = x.shape
    assert C == 1, "exact PyTorch Normalize broadcasting requires C == 1"

    P = n_iters                                    # total erosion pad per side
    shrink = (2 * n_iters + 1) * (k_size - 1)      # receptive-field shrink/axis
    Ho, Wo = H + 2 * P - shrink, W + 2 * P - shrink
    assert Ho > 0 and Wo > 0, "spatial size too small for stacked k x k pools"

    Hin, Win = _round_up(H + 2 * P, 8), _round_up(W + 2 * P, 128)
    Hob, Wob = _round_up(Ho, 8), _round_up(Wo, 128)

    # One-shot pre-pad (erosion border + (8,128) alignment); the pad value is
    # irrelevant -- the kernel overwrites it via the interior mask.
    xp = jnp.pad(x[0], ((P, Hin - H - P), (P, Win - W - P)))

    kernel = functools.partial(
        _postproc_kernel, H=H, W=W, P=P, k=k_size, n_iters=n_iters,
        threshold=threshold, eps=eps, Ho=Ho, Wo=Wo)

    # Normalize is a global reduction over the image, so the whole padded image
    # is one block.
    # TODO(synk): for very large images / v7x, split mean+std into a first pass
    # so the morphology+blur can be halo-tiled along H across both TensorCores.
    vmem_est = 4 * (8 * Hin * Win + 2 * Hob * Wob) + (2 << 20)
    vmem_limit = int(min(max(vmem_est, 32 << 20),
                         int(0.75 * _vmem_capacity_bytes())))

    out = pl.pallas_call(
        kernel,
        out_shape=jax.ShapeDtypeStruct((Hob, Wob), x.dtype),
        in_specs=[pl.BlockSpec(memory_space=pl.ANY)],
        out_specs=pl.BlockSpec(memory_space=pl.ANY),
        scratch_shapes=[pltpu.VMEM((Hin, Win), xp.dtype),
                        pltpu.VMEM((Hob, Wob), x.dtype)],
        compiler_params=pltpu.CompilerParams(vmem_limit_bytes=vmem_limit),
    )(xp)
    return out[None, :Ho, :Wo]


def _reference(x, *, threshold=0.5, n_iters=2, k_size=10, eps=1e-10):
    """Pure-JAX reference mirroring the PyTorch module (C == 1)."""
    img = x[0]
    m = jnp.mean(img)
    std = jnp.sqrt(jnp.sum((img - m) ** 2) / (img.size - 1))
    img = (img - m) / (std + eps)
    win = (k_size, k_size)
    for _ in range(n_iters):   # erosion = -maxpool(-x), padding=1 (-inf pad)
        img = -lax.reduce_window(-img, -jnp.inf, lax.max, win, (1, 1),
                                 [(1, 1), (1, 1)])
    for _ in range(n_iters):   # dilation, no padding
        img = lax.reduce_window(img, -jnp.inf, lax.max, win, (1, 1), "VALID")
    img = lax.reduce_window(img, 0.0, lax.add, win, (1, 1), "VALID") / (k_size ** 2)
    return jnp.where(img > threshold, img, 0.0)[None]


if __name__ == "__main__":
    key = jax.random.PRNGKey(0)
    H = W = 48  # must exceed 41 so the stacked 10x10 stride-1 pools stay valid
    x = jax.random.normal(key, (1, H, W), dtype=jnp.float32)

    out = jax.block_until_ready(post_processing(x))
    ref = jax.block_until_ready(_reference(x))

    assert out.shape == ref.shape == (1, 7, 7), (out.shape, ref.shape)
    assert jnp.allclose(out, ref, rtol=1e-5, atol=1e-5), float(
        jnp.max(jnp.abs(out - ref)))
    print("KERNEL_OK")
</pallas_src>

<mosaic_0001>
module attributes {stable_mosaic.version = 11 : i64} {
  func.func @_postproc_kernel(%arg0: memref<56x128xf32, #tpu.memory_space<any>>, %arg1: memref<8x128xf32, #tpu.memory_space<any>>, %arg2: memref<56x128xf32, #tpu.memory_space<vmem>>, %arg3: memref<8x128xf32, #tpu.memory_space<vmem>>) attributes {dimension_semantics = [], scalar_prefetch = 0 : i64, scratch_operands = 2 : i64, tpu.core_type = #tpu.core_type<tc>} {
    "tpu.region"() ({
      %134 = tpu.sem_alloc : memref<!tpu.dma_semaphore, #tpu.memory_space<semaphore_mem>>
      tpu.enqueue_dma source(%arg0 : memref<56x128xf32, #tpu.memory_space<any>>) target(%arg2 : memref<56x128xf32, #tpu.memory_space<vmem>>) target_semaphore(%134 : memref<!tpu.dma_semaphore, #tpu.memory_space<semaphore_mem>>)
      tpu.wait_dma2 semaphore(%134 : memref<!tpu.dma_semaphore, #tpu.memory_space<semaphore_mem>>) src(%arg0 : memref<56x128xf32, #tpu.memory_space<any>>) dst(%arg2 : memref<56x128xf32, #tpu.memory_space<vmem>>)
      tpu.yield
    }) : () -> ()
    %c0 = arith.constant 0 : index
    %c0_0 = arith.constant 0 : index
    %0 = vector.load %arg2[%c0, %c0_0] : memref<56x128xf32, #tpu.memory_space<vmem>>, vector<56x128xf32>
    %1 = tpu.iota {dimensions = array<i32: 0>} : vector<56x128xi32>
    %2 = tpu.iota {dimensions = array<i32: 1>} : vector<56x128xi32>
    %c2_i32 = arith.constant 2 : i32
    %3 = vector.broadcast %c2_i32 : i32 to vector<56x128xi32>
    %4 = arith.cmpi sge, %1, %3 : vector<56x128xi32>
    %c50_i32 = arith.constant 50 : i32
    %5 = vector.broadcast %c50_i32 : i32 to vector<56x128xi32>
    %6 = arith.cmpi slt, %1, %5 : vector<56x128xi32>
    %7 = arith.andi %4, %6 : vector<56x128xi1>
    %c2_i32_1 = arith.constant 2 : i32
    %8 = vector.broadcast %c2_i32_1 : i32 to vector<56x128xi32>
    %9 = arith.cmpi sge, %2, %8 : vector<56x128xi32>
    %10 = arith.andi %7, %9 : vector<56x128xi1>
    %c50_i32_2 = arith.constant 50 : i32
    %11 = vector.broadcast %c50_i32_2 : i32 to vector<56x128xi32>
    %12 = arith.cmpi slt, %2, %11 : vector<56x128xi32>
    %13 = arith.andi %10, %12 : vector<56x128xi1>
    %cst = arith.constant 0.000000e+00 : f32
    %14 = vector.broadcast %cst : f32 to vector<56x128xf32>
    %15 = arith.select %13, %0, %14 : vector<56x128xi1>, vector<56x128xf32>
    %16 = vector.shape_cast %15 : vector<56x128xf32> to vector<1x56x128xf32>
    %cst_3 = arith.constant dense<0.000000e+00> : vector<1xf32>
    %17 = vector.multi_reduction <add>, %16, %cst_3 [1, 2] : vector<1x56x128xf32> to vector<1xf32>
    %18 = vector.shape_cast %17 : vector<1xf32> to vector<1x1x1xf32>
    %19 = vector.extract %18[0, 0, 0] : f32 from vector<1x1x1xf32>
    %cst_4 = arith.constant 4.34027781E-4 : f32
    %20 = arith.mulf %19, %cst_4 : f32
    %21 = vector.broadcast %20 : f32 to vector<56x128xf32>
    %22 = arith.subf %0, %21 : vector<56x128xf32>
    %cst_5 = arith.constant 0.000000e+00 : f32
    %23 = vector.broadcast %cst_5 : f32 to vector<56x128xf32>
    %24 = arith.select %13, %22, %23 : vector<56x128xi1>, vector<56x128xf32>
    %25 = arith.mulf %24, %24 : vector<56x128xf32>
    %26 = vector.shape_cast %25 : vector<56x128xf32> to vector<1x56x128xf32>
    %cst_6 = arith.constant dense<0.000000e+00> : vector<1xf32>
    %27 = vector.multi_reduction <add>, %26, %cst_6 [1, 2] : vector<1x56x128xf32> to vector<1xf32>
    %28 = vector.shape_cast %27 : vector<1xf32> to vector<1x1x1xf32>
    %29 = vector.extract %28[0, 0, 0] : f32 from vector<1x1x1xf32>
    %cst_7 = arith.constant 4.34216228E-4 : f32
    %30 = arith.mulf %29, %cst_7 : f32
    %31 = math.sqrt %30 : f32
    %cst_8 = arith.constant 1.000000e-10 : f32
    %32 = arith.addf %31, %cst_8 : f32
    %cst_9 = arith.constant 1.000000e+00 : f32
    %33 = arith.divf %cst_9, %32 : f32
    %34 = vector.broadcast %33 : f32 to vector<56x128xf32>
    %35 = arith.mulf %24, %34 : vector<56x128xf32>
    %cst_10 = arith.constant 0x7F800000 : f32
    %36 = vector.broadcast %cst_10 : f32 to vector<56x128xf32>
    %37 = arith.select %13, %35, %36 : vector<56x128xi1>, vector<56x128xf32>
    %c127_i32 = arith.constant 127 : i32
    %38 = tpu.dynamic_rotate %37 by %c127_i32 dim 1 : vector<56x128xf32>, i32 -> vector<56x128xf32>
    %39 = arith.minimumf %37, %38 : vector<56x128xf32>
    %c126_i32 = arith.constant 126 : i32
    %40 = tpu.dynamic_rotate %39 by %c126_i32 dim 1 : vector<56x128xf32>, i32 -> vector<56x128xf32>
    %41 = arith.minimumf %39, %40 : vector<56x128xf32>
    %c124_i32 = arith.constant 124 : i32
    %42 = tpu.dynamic_rotate %41 by %c124_i32 dim 1 : vector<56x128xf32>, i32 -> vector<56x128xf32>
    %43 = arith.minimumf %41, %42 : vector<56x128xf32>
    %c126_i32_11 = arith.constant 126 : i32
    %44 = tpu.dynamic_rotate %43 by %c126_i32_11 dim 1 : vector<56x128xf32>, i32 -> vector<56x128xf32>
    %45 = arith.minimumf %43, %44 : vector<56x128xf32>
    %c55_i32 = arith.constant 55 : i32
    %46 = tpu.dynamic_rotate %45 by %c55_i32 dim 0 : vector<56x128xf32>, i32 -> vector<56x128xf32>
    %47 = arith.minimumf %45, %46 : vector<56x128xf32>
    %c54_i32 = arith.constant 54 : i32
    %48 = tpu.dynamic_rotate %47 by %c54_i32 dim 0 : vector<56x128xf32>, i32 -> vector<56x128xf32>
    %49 = arith.minimumf %47, %48 : vector<56x128xf32>
    %c52_i32 = arith.constant 52 : i32
    %50 = tpu.dynamic_rotate %49 by %c52_i32 dim 0 : vector<56x128xf32>, i32 -> vector<56x128xf32>
    %51 = arith.minimumf %49, %50 : vector<56x128xf32>
    %c54_i32_12 = arith.constant 54 : i32
    %52 = tpu.dynamic_rotate %51 by %c54_i32_12 dim 0 : vector<56x128xf32>, i32 -> vector<56x128xf32>
    %53 = arith.minimumf %51, %52 : vector<56x128xf32>
    %c127_i32_13 = arith.constant 127 : i32
    %54 = tpu.dynamic_rotate %53 by %c127_i32_13 dim 1 : vector<56x128xf32>, i32 -> vector<56x128xf32>
    %55 = arith.minimumf %53, %54 : vector<56x128xf32>
    %c126_i32_14 = arith.constant 126 : i32
    %56 = tpu.dynamic_rotate %55 by %c126_i32_14 dim 1 : vector<56x128xf32>, i32 -> vector<56x128xf32>
    %57 = arith.minimumf %55, %56 : vector<56x128xf32>
    %c124_i32_15 = arith.constant 124 : i32
    %58 = tpu.dynamic_rotate %57 by %c124_i32_15 dim 1 : vector<56x128xf32>, i32 -> vector<56x128xf32>
    %59 = arith.minimumf %57, %58 : vector<56x128xf32>
    %c126_i32_16 = arith.constant 126 : i32
    %60 = tpu.dynamic_rotate %59 by %c126_i32_16 dim 1 : vector<56x128xf32>, i32 -> vector<56x128xf32>
    %61 = arith.minimumf %59, %60 : vector<56x128xf32>
    %c55_i32_17 = arith.constant 55 : i32
    %62 = tpu.dynamic_rotate %61 by %c55_i32_17 dim 0 : vector<56x128xf32>, i32 -> vector<56x128xf32>
    %63 = arith.minimumf %61, %62 : vector<56x128xf32>
    %c54_i32_18 = arith.constant 54 : i32
    %64 = tpu.dynamic_rotate %63 by %c54_i32_18 dim 0 : vector<56x128xf32>, i32 -> vector<56x128xf32>
    %65 = arith.minimumf %63, %64 : vector<56x128xf32>
    %c52_i32_19 = arith.constant 52 : i32
    %66 = tpu.dynamic_rotate %65 by %c52_i32_19 dim 0 : vector<56x128xf32>, i32 -> vector<56x128xf32>
    %67 = arith.minimumf %65, %66 : vector<56x128xf32>
    %c54_i32_20 = arith.constant 54 : i32
    %68 = tpu.dynamic_rotate %67 by %c54_i32_20 dim 0 : vector<56x128xf32>, i32 -> vector<56x128xf32>
    %69 = arith.minimumf %67, %68 : vector<56x128xf32>
    %c127_i32_21 = arith.constant 127 : i32
    %70 = tpu.dynamic_rotate %69 by %c127_i32_21 dim 1 : vector<56x128xf32>, i32 -> vector<56x128xf32>
    %71 = arith.maximumf %69, %70 : vector<56x128xf32>
    %c126_i32_22 = arith.constant 126 : i32
    %72 = tpu.dynamic_rotate %71 by %c126_i32_22 dim 1 : vector<56x128xf32>, i32 -> vector<56x128xf32>
    %73 = arith.maximumf %71, %72 : vector<56x128xf32>
    %c124_i32_23 = arith.constant 124 : i32
    %74 = tpu.dynamic_rotate %73 by %c124_i32_23 dim 1 : vector<56x128xf32>, i32 -> vector<56x128xf32>
    %75 = arith.maximumf %73, %74 : vector<56x128xf32>
    %c126_i32_24 = arith.constant 126 : i32
    %76 = tpu.dynamic_rotate %75 by %c126_i32_24 dim 1 : vector<56x128xf32>, i32 -> vector<56x128xf32>
    %77 = arith.maximumf %75, %76 : vector<56x128xf32>
    %c55_i32_25 = arith.constant 55 : i32
    %78 = tpu.dynamic_rotate %77 by %c55_i32_25 dim 0 : vector<56x128xf32>, i32 -> vector<56x128xf32>
    %79 = arith.maximumf %77, %78 : vector<56x128xf32>
    %c54_i32_26 = arith.constant 54 : i32
    %80 = tpu.dynamic_rotate %79 by %c54_i32_26 dim 0 : vector<56x128xf32>, i32 -> vector<56x128xf32>
    %81 = arith.maximumf %79, %80 : vector<56x128xf32>
    %c52_i32_27 = arith.constant 52 : i32
    %82 = tpu.dynamic_rotate %81 by %c52_i32_27 dim 0 : vector<56x128xf32>, i32 -> vector<56x128xf32>
    %83 = arith.maximumf %81, %82 : vector<56x128xf32>
    %c54_i32_28 = arith.constant 54 : i32
    %84 = tpu.dynamic_rotate %83 by %c54_i32_28 dim 0 : vector<56x128xf32>, i32 -> vector<56x128xf32>
    %85 = arith.maximumf %83, %84 : vector<56x128xf32>
    %c127_i32_29 = arith.constant 127 : i32
    %86 = tpu.dynamic_rotate %85 by %c127_i32_29 dim 1 : vector<56x128xf32>, i32 -> vector<56x128xf32>
    %87 = arith.maximumf %85, %86 : vector<56x128xf32>
    %c126_i32_30 = arith.constant 126 : i32
    %88 = tpu.dynamic_rotate %87 by %c126_i32_30 dim 1 : vector<56x128xf32>, i32 -> vector<56x128xf32>
    %89 = arith.maximumf %87, %88 : vector<56x128xf32>
    %c124_i32_31 = arith.constant 124 : i32
    %90 = tpu.dynamic_rotate %89 by %c124_i32_31 dim 1 : vector<56x128xf32>, i32 -> vector<56x128xf32>
    %91 = arith.maximumf %89, %90 : vector<56x128xf32>
    %c126_i32_32 = arith.constant 126 : i32
    %92 = tpu.dynamic_rotate %91 by %c126_i32_32 dim 1 : vector<56x128xf32>, i32 -> vector<56x128xf32>
    %93 = arith.maximumf %91, %92 : vector<56x128xf32>
    %c55_i32_33 = arith.constant 55 : i32
    %94 = tpu.dynamic_rotate %93 by %c55_i32_33 dim 0 : vector<56x128xf32>, i32 -> vector<56x128xf32>
    %95 = arith.maximumf %93, %94 : vector<56x128xf32>
    %c54_i32_34 = arith.constant 54 : i32
    %96 = tpu.dynamic_rotate %95 by %c54_i32_34 dim 0 : vector<56x128xf32>, i32 -> vector<56x128xf32>
    %97 = arith.maximumf %95, %96 : vector<56x128xf32>
    %c52_i32_35 = arith.constant 52 : i32
    %98 = tpu.dynamic_rotate %97 by %c52_i32_35 dim 0 : vector<56x128xf32>, i32 -> vector<56x128xf32>
    %99 = arith.maximumf %97, %98 : vector<56x128xf32>
    %c54_i32_36 = arith.constant 54 : i32
    %100 = tpu.dynamic_rotate %99 by %c54_i32_36 dim 0 : vector<56x128xf32>, i32 -> vector<56x128xf32>
    %101 = arith.maximumf %99, %100 : vector<56x128xf32>
    %c127_i32_37 = arith.constant 127 : i32
    %102 = tpu.dynamic_rotate %101 by %c127_i32_37 dim 1 : vector<56x128xf32>, i32 -> vector<56x128xf32>
    %103 = arith.addf %101, %102 : vector<56x128xf32>
    %c126_i32_38 = arith.constant 126 : i32
    %104 = tpu.dynamic_rotate %103 by %c126_i32_38 dim 1 : vector<56x128xf32>, i32 -> vector<56x128xf32>
    %105 = arith.addf %103, %104 : vector<56x128xf32>
    %c124_i32_39 = arith.constant 124 : i32
    %106 = tpu.dynamic_rotate %105 by %c124_i32_39 dim 1 : vector<56x128xf32>, i32 -> vector<56x128xf32>
    %107 = arith.addf %105, %106 : vector<56x128xf32>
    %c126_i32_40 = arith.constant 126 : i32
    %108 = tpu.dynamic_rotate %107 by %c126_i32_40 dim 1 : vector<56x128xf32>, i32 -> vector<56x128xf32>
    %109 = arith.addf %103, %108 : vector<56x128xf32>
    %c55_i32_41 = arith.constant 55 : i32
    %110 = tpu.dynamic_rotate %109 by %c55_i32_41 dim 0 : vector<56x128xf32>, i32 -> vector<56x128xf32>
    %111 = arith.addf %109, %110 : vector<56x128xf32>
    %c54_i32_42 = arith.constant 54 : i32
    %112 = tpu.dynamic_rotate %111 by %c54_i32_42 dim 0 : vector<56x128xf32>, i32 -> vector<56x128xf32>
    %113 = arith.addf %111, %112 : vector<56x128xf32>
    %c52_i32_43 = arith.constant 52 : i32
    %114 = tpu.dynamic_rotate %113 by %c52_i32_43 dim 0 : vector<56x128xf32>, i32 -> vector<56x128xf32>
    %115 = arith.addf %113, %114 : vector<56x128xf32>
    %c54_i32_44 = arith.constant 54 : i32
    %116 = tpu.dynamic_rotate %115 by %c54_i32_44 dim 0 : vector<56x128xf32>, i32 -> vector<56x128xf32>
    %117 = arith.addf %111, %116 : vector<56x128xf32>
    %118 = vector.extract_strided_slice %117 {offsets = [0, 0], sizes = [8, 128], strides = [1, 1]} : vector<56x128xf32> to vector<8x128xf32>
    %cst_45 = arith.constant 0.00999999977 : f32
    %119 = vector.broadcast %cst_45 : f32 to vector<8x128xf32>
    %120 = arith.mulf %118, %119 : vector<8x128xf32>
    %121 = tpu.iota {dimensions = array<i32: 0>} : vector<8x128xi32>
    %122 = tpu.iota {dimensions = array<i32: 1>} : vector<8x128xi32>
    %c7_i32 = arith.constant 7 : i32
    %123 = vector.broadcast %c7_i32 : i32 to vector<8x128xi32>
    %124 = arith.cmpi slt, %121, %123 : vector<8x128xi32>
    %c7_i32_46 = arith.constant 7 : i32
    %125 = vector.broadcast %c7_i32_46 : i32 to vector<8x128xi32>
    %126 = arith.cmpi slt, %122, %125 : vector<8x128xi32>
    %127 = arith.andi %124, %126 : vector<8x128xi1>
    %cst_47 = arith.constant 5.000000e-01 : f32
    %128 = vector.broadcast %cst_47 : f32 to vector<8x128xf32>
    %129 = arith.cmpf ogt, %120, %128 : vector<8x128xf32>
    %130 = arith.andi %127, %129 : vector<8x128xi1>
    %cst_48 = arith.constant 0.000000e+00 : f32
    %131 = vector.broadcast %cst_48 : f32 to vector<8x128xf32>
    %132 = arith.select %130, %120, %131 : vector<8x128xi1>, vector<8x128xf32>
    %c0_49 = arith.constant 0 : index
    %c0_50 = arith.constant 0 : index
    %133 = vector.load %arg3[%c0_49, %c0_50] : memref<8x128xf32, #tpu.memory_space<vmem>>, vector<8x128xf32>
    tpu.vector_store %arg3[%c0_49, %c0_50], %132 {strides = array<i32>} : memref<8x128xf32, #tpu.memory_space<vmem>>, vector<8x128xf32>,
    "tpu.region"() ({
      %134 = tpu.sem_alloc : memref<!tpu.dma_semaphore, #tpu.memory_space<semaphore_mem>>
      tpu.enqueue_dma source(%arg3 : memref<8x128xf32, #tpu.memory_space<vmem>>) target(%arg1 : memref<8x128xf32, #tpu.memory_space<any>>) target_semaphore(%134 : memref<!tpu.dma_semaphore, #tpu.memory_space<semaphore_mem>>)
      tpu.wait_dma2 semaphore(%134 : memref<!tpu.dma_semaphore, #tpu.memory_space<semaphore_mem>>) src(%arg3 : memref<8x128xf32, #tpu.memory_space<vmem>>) dst(%arg1 : memref<8x128xf32, #tpu.memory_space<any>>)
      tpu.yield
    }) : () -> ()
    return
  }
}

</mosaic_0001>

<bundles_post_ra>
// kernel: tpu_custom_call.1
= control target key start
LH: loop header
LB: loop body
LE: loop exit
PB: predicated region body
PF: predicated region fallthrough
CT: control target
= control target key end

     0   :  { %s1007_s6 = smov [#allocation2]   ;;  %s1472_s0 = inlined_call_operand.hbm [shape: f32[56,128], index: 0, kind: input, shape index: {}]   ;;  %s1473_s1 = inlined_call_operand.hbm [shape: f32[8,128], index: 1, kind: output, shape index: {}]  }
   0x1   :  { %s13_s7 = sshll.u32 %s1007_s6, 4  ;;  %s14_s7 = int_to_ptr.vmem [resolvable:$true] %s13_s7 }
   0x2   :  { %s971_s8 = scalar_lea.vmem %s14_s7, 896  ;;  %p976_p1 = scmp.lt.s32.totalorder %s14_s7, %s14_s7 }
   0x3   :  { %p972_p0 = scmp.ne.s32.totalorder %s14_s7, %s971_s8  ;;  %p977_p2 = scmp.lt.s32.totalorder %s971_s8, %s971_s8 }
   0x5   :  { %p978_p3 = por %p977_p2, %p976_p1 }
   0x7   :  { %p979_p4 = pnand %p978_p3, %p972_p0 }
   0x9   :  { %982 = shalt.err (!%p979_p4)  }
   0xa   :  { %16 = dma.hbm_to_vmem [thread:$0]  %s1472_s0, 896, %s14_s7, [#allocation4] }
   0xb   :  { %1003 = dma.done.wait [#allocation4], 896 }
   0xc   :  { %1004 = vsyncadd [#allocation4], 4294966400  ;;  %v27_v0 = vlaneseq  ;;  %v20_v3 = vld [vmem:[#allocation2] sm:$0xff]  ;;  %v21_v5 = vld [vmem:[#allocation2 + $0x8] sm:$0xff]  ;;  %s1008_s17 = smov 127   ;;  %s1009_s18 = smov 126  }
   0xd   :  { %v22_v6 = vld [vmem:[#allocation2 + $0x10] sm:$0xff]  ;;  %v23_v9 = vld [vmem:[#allocation2 + $0x18] sm:$0xff]  ;;  %v24_v13 = vld [vmem:[#allocation2 + $0x20] sm:$0xff]  ;;  %s1010_s19 = smov 124  }
   0xe   :  { %v1025_v1 = vshrl.u32 %v27_v0, 7  ;;  %v1027_v2 = vand.u32 127, %v27_v0  ;;  %v25_v16 = vld [vmem:[#allocation2 + $0x28] sm:$0xff]  ;;  %v26_v19 = vld [vmem:[#allocation2 + $0x30] sm:$0xff] }
  0x10   :  { %v34_v4 = vadd.s32 48, %v1025_v1  ;;  %vm37_vm0 = vcmp.ge.s32.totalorder %v1025_v1, 2  ;;  %vm58_vm1 = vcmp.ge.s32.totalorder %v1027_v2, 2  ;;  %vm66_vm2 = vcmp.lt.s32.totalorder %v1027_v2, 50 }
  0x11   :  { %vm59_vm3 = vmand %vm37_vm0, %vm58_vm1  ;;  %vm254_vm11 = vcmp.lt.s32.totalorder %v1025_v1, 7  ;;  %vm276_vm12 = vcmp.lt.s32.totalorder %v1025_v1, 6  ;;  %vm298_vm13 = vcmp.lt.s32.totalorder %v1025_v1, 4  ;;  %vm926_vm14 = vcmp.lt.s32.totalorder %v1027_v2, 7 }
  0x12   :  { %vm1035_vm4 = vmand %vm59_vm3, %vm66_vm2  ;;  %vm50_vm5 = vcmp.lt.s32.totalorder %v34_v4, 50 }
  0x13   :  { %v74_v8 = vsel %vm1035_vm4, %v20_v3, 0.0  ;;  %vm1043_vm6 = vmand %vm58_vm1, %vm66_vm2 }
  0x14   :  { %v75_v11 = vsel %vm1043_vm6, %v21_v5, 0.0  ;;  %v76_v12 = vsel %vm1043_vm6, %v22_v6, 0.0  ;;  %vm65_vm7 = vmand %vm50_vm5, %vm58_vm1  ;;  %v77_v15 = vsel %vm1043_vm6, %v23_v9, 0.0  ;;  %v78_v18 = vsel %vm1043_vm6, %v24_v13, 0.0 }
  0x15   :  { %v81_v14 = vadd.f32 %v75_v11, %v74_v8  ;;  %vm1057_vm8 = vmand %vm65_vm7, %vm66_vm2  ;;  %v79_v22 = vsel %vm1043_vm6, %v25_v16, 0.0 }
  0x16   :  { %v80_v24 = vsel %vm1057_vm8, %v26_v19, 0.0  ;;  %vm927_vm15 = vmand %vm254_vm11, %vm926_vm14 }
  0x17   :  { %v82_v17 = vadd.f32 %v81_v14, %v76_v12 }
  0x19   :  { %v83_v21 = vadd.f32 %v82_v17, %v77_v15 }
  0x1b   :  { %v84_v23 = vadd.f32 %v83_v21, %v78_v18 }
  0x1d   :  { %v85_v25 = vadd.f32 %v84_v23, %v79_v22 }
  0x1f   :  { %v86_v26 = vadd.f32 %v85_v25, %v80_v24 }
  0x21   :  { %87 = vadd.xlane.f32.xlu0 %v86_v26 }
  0xaa   :  { %v88_v27 = vpop.xlane.xlu0 %87 }
  0xab   :  { %v89_v28 = vrot.slane %v88_v27, 4 }
  0xad   :  { %v90_v29 = vadd.f32 %v89_v28, %v88_v27 }
  0xaf   :  { %v91_v30 = vrot.slane %v90_v29, 2 }
  0xb1   :  { %v92_v31 = vadd.f32 %v91_v30, %v90_v29 }
  0xb3   :  { %v93_v32 = vrot.slane %v92_v31, 1 }
  0xb5   :  { %v94_v33 = vadd.f32 %v93_v32, %v92_v31 }
  0xb7   :  { %946 = vpush %v94_v33 }
  0xe8   :  { %s947_s0 = spop %946 }
  0xe9   :  { %s96_s11 = smul.f32 0.00043402778, %s947_s0 }
  0xeb   :  { %v97_v34 = vstv %s96_s11 }
  0xec   :  { %v98_v35 = vsub.f32 %v20_v3, %v97_v34  ;;  %v99_v36 = vsub.f32 %v21_v5, %v97_v34  ;;  %v100_v37 = vsub.f32 %v22_v6, %v97_v34  ;;  %v101_v38 = vsub.f32 %v23_v9, %v97_v34 }
  0xed   :  { %v102_v41 = vsub.f32 %v24_v13, %v97_v34  ;;  %v103_v45 = vsub.f32 %v25_v16, %v97_v34  ;;  %v104_v49 = vsub.f32 %v26_v19, %v97_v34 }
  0xee   :  { %v105_v39 = vsel %vm1035_vm4, %v98_v35, 0.0  ;;  %v106_v40 = vsel %vm1043_vm6, %v99_v36, 0.0  ;;  %v107_v42 = vsel %vm1043_vm6, %v100_v37, 0.0  ;;  %v108_v46 = vsel %vm1043_vm6, %v101_v38, 0.0 }
  0xef   :  { %v112_v43 = vmul.f32 %v105_v39, %v105_v39  ;;  %v113_v44 = vmul.f32 %v106_v40, %v106_v40  ;;  %v114_v47 = vmul.f32 %v107_v42, %v107_v42  ;;  %v109_v50 = vsel %vm1043_vm6, %v102_v41, 0.0 }
  0xf0   :  { %v115_v51 = vmul.f32 %v108_v46, %v108_v46  ;;  %v110_v53 = vsel %vm1043_vm6, %v103_v45, 0.0  ;;  %v116_v54 = vmul.f32 %v109_v50, %v109_v50  ;;  %v111_v56 = vsel %vm1057_vm8, %v104_v49, 0.0 }
  0xf1   :  { %v119_v48 = vadd.f32 %v113_v44, %v112_v43  ;;  %v117_v57 = vmul.f32 %v110_v53, %v110_v53  ;;  %v118_v59 = vmul.f32 %v111_v56, %v111_v56 }
  0xf3   :  { %v120_v52 = vadd.f32 %v119_v48, %v114_v47 }
  0xf5   :  { %v121_v55 = vadd.f32 %v120_v52, %v115_v51 }
  0xf7   :  { %v122_v58 = vadd.f32 %v121_v55, %v116_v54 }
  0xf9   :  { %v123_v60 = vadd.f32 %v122_v58, %v117_v57 }
  0xfb   :  { %v124_v61 = vadd.f32 %v123_v60, %v118_v59 }
  0xfd   :  { %125 = vadd.xlane.f32.xlu0 %v124_v61 }
 0x186   :  { %v126_v62 = vpop.xlane.xlu0 %125 }
 0x187   :  { %v127_v63 = vrot.slane %v126_v62, 4 }
 0x189   :  { %v128_v0 = vadd.f32 %v127_v63, %v126_v62 }
 0x18b   :  { %v129_v3 = vrot.slane %v128_v0, 2 }
 0x18d   :  { %v130_v4 = vadd.f32 %v129_v3, %v128_v0 }
 0x18f   :  { %v131_v5 = vrot.slane %v130_v4, 1 }
 0x191   :  { %v132_v6 = vadd.f32 %v131_v5, %v130_v4 }
 0x193   :  { %948 = vpush %v132_v6 }
 0x1c4   :  { %s949_s12 = spop %948 }
 0x1c5   :  { %s134_s13 = smul.f32 0.00043421623, %s949_s12 }
 0x1c7   :  { %v135_v8 = vstv %s134_s13 }
 0x1c8   :  { %959 = vrsqrt.f32 %v135_v8  ;;  %vm138_vm9 = vcmp.eq.f32.partialorder %v135_v8, inf  ;;  %v141_v12 = vand.u32 2147483648, %v135_v8  ;;  %vm140_vm10 = vcmp.eq.f32.partialorder %v135_v8, 0.0 }
 0x1d5   :  { %v960_v9 = vpop.eup %959 }
 0x1d6   :  { %v137_v11 = vmul.f32 %v960_v9, %v135_v8 }
 0x1d8   :  { %v139_v13 = vsel %vm138_vm9, %v135_v8, %v137_v11 }
 0x1d9   :  { %v142_v14 = vsel %vm140_vm10, %v141_v12, %v139_v13 }
 0x1da   :  { %950 = vpush %v142_v14 }
 0x20b   :  { %s951_s14 = spop %950 }
 0x20c   :  { %s144_s15 = sadd.f32 1e-10, %s951_s14 }
 0x20e   :  { %v145_v15 = vstv %s144_s15 }
 0x20f   :  { %961 = vrcp.f32 %v145_v15 }
 0x21c   :  { %v962_v16 = vpop.eup %961 }
 0x21d   :  { %952 = vpush %v962_v16 }
 0x24e   :  { %s953_s16 = spop %952 }
 0x24f   :  { %v148_v17 = vstv %s953_s16 }
 0x250   :  { %v151_v18 = vmul.f32 %v148_v17, %v107_v42  ;;  %v149_v19 = vmul.f32 %v148_v17, %v105_v39  ;;  %v150_v23 = vmul.f32 %v148_v17, %v106_v40  ;;  %v152_v25 = vmul.f32 %v148_v17, %v108_v46 }
 0x251   :  { %v153_v27 = vmul.f32 %v148_v17, %v109_v50  ;;  %v154_v28 = vmul.f32 %v148_v17, %v110_v53  ;;  %v155_v30 = vmul.f32 %v148_v17, %v111_v56 }
 0x252   :  { %v158_v21 = vsel %vm1043_vm6, %v151_v18, inf  ;;  %v156_v22 = vsel %vm1035_vm4, %v149_v19, inf  ;;  %v157_v24 = vsel %vm1043_vm6, %v150_v23, inf  ;;  %v159_v26 = vsel %vm1043_vm6, %v152_v25, inf }
 0x253   :  { %167 = vrot.lane.b32.xlu0 %v158_v21, %s1008_s17  ;;  %163 = vrot.lane.b32.xlu1 %v156_v22, %s1008_s17  ;;  %v160_v7 = vsel %vm1043_vm6, %v153_v27, inf  ;;  %v161_v29 = vsel %vm1043_vm6, %v154_v28, inf  ;;  %v162_v31 = vsel %vm1057_vm8, %v155_v30, inf }
 0x257   :  { %165 = vrot.lane.b32.xlu1 %v157_v24, %s1008_s17 }
 0x25b   :  { %169 = vrot.lane.b32.xlu1 %v159_v26, %s1008_s17 }
 0x25f   :  { %171 = vrot.lane.b32.xlu1 %v160_v7, %s1008_s17 }
 0x263   :  { %173 = vrot.lane.b32.xlu1 %v161_v29, %s1008_s17 }
 0x267   :  { %175 = vrot.lane.b32.xlu1 %v162_v31, %s1008_s17 }
 0x2c5   :  { %v168_v32 = vpop.permute.xlu0 %167  ;;  %v164_v33 = vpop.permute.xlu1 %163 }
 0x2c6   :  { %v179_v34 = vmin.f32 %v158_v21, %v168_v32  ;;  %v177_v35 = vmin.f32 %v156_v22, %v164_v33 }
 0x2c8   :  { %188 = vrot.lane.b32.xlu0 %v179_v34, %s1009_s18  ;;  %184 = vrot.lane.b32.xlu1 %v177_v35, %s1009_s18 }
 0x2c9   :  { %v166_v36 = vpop.permute.xlu1 %165 }
 0x2ca   :  { %v178_v10 = vmin.f32 %v157_v24, %v166_v36 }
 0x2cc   :  { %186 = vrot.lane.b32.xlu1 %v178_v10, %s1009_s18 }
 0x2cd   :  { %v170_v37 = vpop.permute.xlu1 %169 }
 0x2ce   :  { %v180_v38 = vmin.f32 %v159_v26, %v170_v37 }
 0x2d0   :  { %190 = vrot.lane.b32.xlu1 %v180_v38, %s1009_s18 }
 0x2d1   :  { %v172_v20 = vpop.permute.xlu1 %171 }
 0x2d2   :  { %v181_v39 = vmin.f32 %v160_v7, %v172_v20 }
 0x2d4   :  { %192 = vrot.lane.b32.xlu0 %v181_v39, %s1009_s18 }
 0x2d5   :  { %v174_v40 = vpop.permute.xlu1 %173 }
 0x2d6   :  { %v182_v41 = vmin.f32 %v161_v29, %v174_v40 }
 0x2d8   :  { %194 = vrot.lane.b32.xlu1 %v182_v41, %s1009_s18 }
 0x2d9   :  { %v176_v42 = vpop.permute.xlu1 %175 }
 0x2da   :  { %v183_v43 = vmin.f32 %v162_v31, %v176_v42 }
 0x2dc   :  { %196 = vrot.lane.b32.xlu0 %v183_v43, %s1009_s18 }
 0x33a   :  { %v185_v44 = vpop.permute.xlu1 %184  ;;  %v189_v46 = vpop.permute.xlu0 %188 }
 0x33b   :  { %v198_v45 = vmin.f32 %v177_v35, %v185_v44  ;;  %v200_v48 = vmin.f32 %v179_v34, %v189_v46 }
 0x33d   :  { %205 = vrot.lane.b32.xlu1 %v198_v45, %s1010_s19 }
 0x33e   :  { %v187_v47 = vpop.permute.xlu1 %186 }
 0x33f   :  { %v199_v49 = vmin.f32 %v178_v10, %v187_v47 }
 0x341   :  { %209 = vrot.lane.b32.xlu1 %v200_v48, %s1010_s19  ;;  %207 = vrot.lane.b32.xlu0 %v199_v49, %s1010_s19 }
 0x342   :  { %v191_v50 = vpop.permute.xlu1 %190 }
 0x343   :  { %v201_v51 = vmin.f32 %v180_v38, %v191_v50 }
 0x345   :  { %211 = vrot.lane.b32.xlu0 %v201_v51, %s1010_s19 }
 0x346   :  { %v193_v52 = vpop.permute.xlu0 %192 }
 0x347   :  { %v202_v53 = vmin.f32 %v181_v39, %v193_v52 }
 0x349   :  { %213 = vrot.lane.b32.xlu1 %v202_v53, %s1010_s19 }
 0x34a   :  { %v195_v54 = vpop.permute.xlu1 %194 }
 0x34b   :  { %v203_v55 = vmin.f32 %v182_v41, %v195_v54 }
 0x34d   :  { %215 = vrot.lane.b32.xlu0 %v203_v55, %s1010_s19 }
 0x34e   :  { %v197_v56 = vpop.permute.xlu0 %196 }
 0x34f   :  { %v204_v57 = vmin.f32 %v183_v43, %v197_v56 }
 0x351   :  { %217 = vrot.lane.b32.xlu1 %v204_v57, %s1010_s19 }
 0x3af   :  { %v206_v58 = vpop.permute.xlu1 %205 }
 0x3b0   :  { %v219_v59 = vmin.f32 %v198_v45, %v206_v58 }
 0x3b2   :  { %226 = vrot.lane.b32.xlu0 %v219_v59, %s1009_s18 }
 0x3b3   :  { %v208_v60 = vpop.permute.xlu0 %207  ;;  %v210_v61 = vpop.permute.xlu1 %209 }
 0x3b4   :  { %v220_v62 = vmin.f32 %v199_v49, %v208_v60  ;;  %v221_v63 = vmin.f32 %v200_v48, %v210_v61 }
 0x3b6   :  { %228 = vrot.lane.b32.xlu1 %v220_v62, %s1009_s18  ;;  %230 = vrot.lane.b32.xlu0 %v221_v63, %s1009_s18 }
 0x3b7   :  { %v212_v0 = vpop.permute.xlu0 %211 }
 0x3b8   :  { %v222_v3 = vmin.f32 %v201_v51, %v212_v0 }
 0x3ba   :  { %232 = vrot.lane.b32.xlu1 %v222_v3, %s1009_s18 }
 0x3bb   :  { %v214_v4 = vpop.permute.xlu1 %213 }
 0x3bc   :  { %v223_v5 = vmin.f32 %v202_v53, %v214_v4 }
 0x3be   :  { %234 = vrot.lane.b32.xlu0 %v223_v5, %s1009_s18 }
 0x3bf   :  { %v216_v6 = vpop.permute.xlu0 %215 }
 0x3c0   :  { %v224_v8 = vmin.f32 %v203_v55, %v216_v6 }
 0x3c2   :  { %236 = vrot.lane.b32.xlu1 %v224_v8, %s1009_s18 }
 0x3c3   :  { %v218_v9 = vpop.permute.xlu1 %217 }
 0x3c4   :  { %v225_v11 = vmin.f32 %v204_v57, %v218_v9 }
 0x3c6   :  { %238 = vrot.lane.b32.xlu0 %v225_v11, %s1009_s18 }
 0x424   :  { %v227_v12 = vpop.permute.xlu0 %226 }
 0x425   :  { %v240_v13 = vmin.f32 %v219_v59, %v227_v12 }
 0x427   :  { %v247_v18 = vrot.slane %v240_v13, 1 }
 0x428   :  { %v231_v14 = vpop.permute.xlu0 %230  ;;  %v229_v15 = vpop.permute.xlu1 %228 }
 0x429   :  { %v242_v16 = vmin.f32 %v221_v63, %v231_v14  ;;  %v241_v17 = vmin.f32 %v220_v62, %v229_v15 }
 0x42b   :  { %v249_v19 = vrot.slane %v242_v16, 1  ;;  %v248_v21 = vrot.slane %v241_v17, 1 }
 0x42c   :  { %v233_v22 = vpop.permute.xlu1 %232 }
 0x42d   :  { %v259_v23 = vsel %vm254_vm11, %v248_v21, %v249_v19  ;;  %v260_v24 = vsel %vm254_vm11, %v247_v18, %v248_v21  ;;  %v243_v25 = vmin.f32 %v222_v3, %v233_v22 }
 0x42e   :  { %v262_v26 = vmin.f32 %v240_v13, %v260_v24  ;;  %v263_v27 = vmin.f32 %v241_v17, %v259_v23 }
 0x42f   :  { %v250_v7 = vrot.slane %v243_v25, 1 }
 0x430   :  { %v269_v28 = vrot.slane %v262_v26, 2  ;;  %v270_v29 = vrot.slane %v263_v27, 2  ;;  %v235_v30 = vpop.permute.xlu0 %234 }
 0x431   :  { %v258_v31 = vsel %vm254_vm11, %v249_v19, %v250_v7  ;;  %v244_v32 = vmin.f32 %v223_v5, %v235_v30 }
 0x432   :  { %v282_v33 = vsel %vm276_vm12, %v269_v28, %v270_v29  ;;  %v264_v34 = vmin.f32 %v242_v16, %v258_v31 }
 0x433   :  { %v251_v35 = vrot.slane %v244_v32, 1  ;;  %v284_v37 = vmin.f32 %v262_v26, %v282_v33 }
 0x434   :  { %v271_v36 = vrot.slane %v264_v34, 2  ;;  %v237_v10 = vpop.permute.xlu1 %236 }
 0x435   :  { %v257_v38 = vsel %vm254_vm11, %v250_v7, %v251_v35  ;;  %v245_v20 = vmin.f32 %v224_v8, %v237_v10  ;;  %v291_v47 = vrot.slane %v284_v37, 4 }
 0x436   :  { %v265_v39 = vmin.f32 %v243_v25, %v257_v38  ;;  %v281_v40 = vsel %vm276_vm12, %v270_v29, %v271_v36 }
 0x437   :  { %v252_v41 = vrot.slane %v245_v20, 1  ;;  %v285_v42 = vmin.f32 %v263_v27, %v281_v40 }
 0x438   :  { %v272_v43 = vrot.slane %v265_v39, 2  ;;  %v239_v44 = vpop.permute.xlu0 %238 }
 0x439   :  { %v256_v45 = vsel %vm254_vm11, %v251_v35, %v252_v41  ;;  %v246_v46 = vmin.f32 %v225_v11, %v239_v44  ;;  %v292_v48 = vrot.slane %v285_v42, 4 }
 0x43a   :  { %v280_v49 = vsel %vm276_vm12, %v271_v36, %v272_v43  ;;  %v266_v50 = vmin.f32 %v244_v32, %v256_v45 }
 0x43b   :  { %v286_v51 = vmin.f32 %v264_v34, %v280_v49  ;;  %v253_v52 = vrot.slane %v246_v46, 1  ;;  %v304_v53 = vsel %vm298_vm13, %v291_v47, %v292_v48 }
 0x43c   :  { %v273_v54 = vrot.slane %v266_v50, 2  ;;  %v306_v58 = vmin.f32 %v284_v37, %v304_v53 }
 0x43d   :  { %v255_v55 = vsel %vm254_vm11, %v252_v41, %v253_v52  ;;  %v261_v56 = vsel %vm254_vm11, %v253_v52, %v247_v18  ;;  %v293_v57 = vrot.slane %v286_v51, 4 }
 0x43e   :  { %v279_v59 = vsel %vm276_vm12, %v272_v43, %v273_v54  ;;  %v267_v60 = vmin.f32 %v245_v20, %v255_v55  ;;  %v268_v61 = vmin.f32 %v246_v46, %v261_v56  ;;  %v313_v5 = vrot.slane %v306_v58, 2 }
 0x43f   :  { %v287_v62 = vmin.f32 %v265_v39, %v279_v59  ;;  %v303_v63 = vsel %vm298_vm13, %v292_v48, %v293_v57 }
 0x440   :  { %v274_v0 = vrot.slane %v267_v60, 2  ;;  %v275_v3 = vrot.slane %v268_v61, 2  ;;  %v307_v4 = vmin.f32 %v285_v42, %v303_v63 }
 0x441   :  { %v294_v6 = vrot.slane %v287_v62, 4 }
 0x442   :  { %v277_v8 = vsel %vm276_vm12, %v274_v0, %v275_v3  ;;  %v278_v9 = vsel %vm276_vm12, %v273_v54, %v274_v0  ;;  %v283_v11 = vsel %vm276_vm12, %v275_v3, %v269_v28  ;;  %v314_v12 = vrot.slane %v307_v4, 2 }
 0x443   :  { %v288_v13 = vmin.f32 %v266_v50, %v278_v9  ;;  %v289_v14 = vmin.f32 %v267_v60, %v277_v8  ;;  %v290_v15 = vmin.f32 %v268_v61, %v283_v11  ;;  %v302_v16 = vsel %vm298_vm13, %v293_v57, %v294_v6 }
 0x444   :  { %v325_v17 = vsel %vm276_vm12, %v313_v5, %v314_v12  ;;  %v308_v18 = vmin.f32 %v286_v51, %v302_v16 }
 0x445   :  { %v296_v19 = vrot.slane %v289_v14, 4  ;;  %v297_v21 = vrot.slane %v290_v15, 4  ;;  %v327_v22 = vmin.f32 %v306_v58, %v325_v17  ;;  %v295_v23 = vrot.slane %v288_v13, 4 }
 0x446   :  { %v315_v24 = vrot.slane %v308_v18, 2 }
 0x447   :  { %v299_v25 = vsel %vm298_vm13, %v296_v19, %v297_v21  ;;  %v305_v26 = vsel %vm298_vm13, %v297_v21, %v291_v47  ;;  %334 = vrot.lane.b32.xlu1 %v327_v22, %s1008_s17  ;;  %v301_v27 = vsel %vm298_vm13, %v294_v6, %v295_v23  ;;  %v300_v7 = vsel %vm298_vm13, %v295_v23, %v296_v19 }
 0x448   :  { %v312_v28 = vmin.f32 %v290_v15, %v305_v26  ;;  %v324_v29 = vsel %vm276_vm12, %v314_v12, %v315_v24  ;;  %v309_v30 = vmin.f32 %v287_v62, %v301_v27  ;;  %v310_v31 = vmin.f32 %v288_v13, %v300_v7 }
 0x449   :  { %v328_v32 = vmin.f32 %v307_v4, %v324_v29  ;;  %v311_v33 = vmin.f32 %v289_v14, %v299_v25 }
 0x44a   :  { %v316_v34 = vrot.slane %v309_v30, 2  ;;  %v317_v35 = vrot.slane %v310_v31, 2  ;;  %v319_v36 = vrot.slane %v312_v28, 2 }
 0x44b   :  { %336 = vrot.lane.b32.xlu0 %v328_v32, %s1008_s17  ;;  %v318_v10 = vrot.slane %v311_v33, 2 }
 0x44c   :  { %v323_v37 = vsel %vm276_vm12, %v315_v24, %v316_v34  ;;  %v322_v38 = vsel %vm276_vm12, %v316_v34, %v317_v35  ;;  %v326_v44 = vsel %vm276_vm12, %v319_v36, %v313_v5 }
 0x44d   :  { %v329_v20 = vmin.f32 %v308_v18, %v323_v37  ;;  %v330_v39 = vmin.f32 %v309_v30, %v322_v38  ;;  %v321_v40 = vsel %vm276_vm12, %v317_v35, %v318_v10  ;;  %v320_v41 = vsel %vm276_vm12, %v318_v10, %v319_v36 }
 0x44e   :  { %v331_v42 = vmin.f32 %v310_v31, %v321_v40  ;;  %v332_v43 = vmin.f32 %v311_v33, %v320_v41  ;;  %v333_v45 = vmin.f32 %v312_v28, %v326_v44 }
 0x44f   :  { %338 = vrot.lane.b32.xlu1 %v329_v20, %s1008_s17  ;;  %340 = vrot.lane.b32.xlu0 %v330_v39, %s1008_s17 }
 0x453   :  { %342 = vrot.lane.b32.xlu1 %v331_v42, %s1008_s17  ;;  %344 = vrot.lane.b32.xlu0 %v332_v43, %s1008_s17 }
 0x457   :  { %346 = vrot.lane.b32.xlu1 %v333_v45, %s1008_s17 }
 0x4b9   :  { %v335_v46 = vpop.permute.xlu1 %334 }
 0x4ba   :  { %v348_v47 = vmin.f32 %v327_v22, %v335_v46 }
 0x4bc   :  { %355 = vrot.lane.b32.xlu0 %v348_v47, %s1009_s18 }
 0x4bd   :  { %v337_v48 = vpop.permute.xlu0 %336 }
 0x4be   :  { %v349_v49 = vmin.f32 %v328_v32, %v337_v48 }
 0x4c0   :  { %357 = vrot.lane.b32.xlu1 %v349_v49, %s1009_s18 }
 0x4c1   :  { %v341_v50 = vpop.permute.xlu0 %340  ;;  %v339_v51 = vpop.permute.xlu1 %338 }
 0x4c2   :  { %v351_v52 = vmin.f32 %v330_v39, %v341_v50  ;;  %v350_v53 = vmin.f32 %v329_v20, %v339_v51 }
 0x4c4   :  { %361 = vrot.lane.b32.xlu1 %v351_v52, %s1009_s18  ;;  %359 = vrot.lane.b32.xlu0 %v350_v53, %s1009_s18 }
 0x4c5   :  { %v345_v54 = vpop.permute.xlu0 %344  ;;  %v343_v55 = vpop.permute.xlu1 %342 }
 0x4c6   :  { %v353_v56 = vmin.f32 %v332_v43, %v345_v54  ;;  %v352_v57 = vmin.f32 %v331_v42, %v343_v55 }
 0x4c8   :  { %365 = vrot.lane.b32.xlu1 %v353_v56, %s1009_s18  ;;  %363 = vrot.lane.b32.xlu0 %v352_v57, %s1009_s18 }
 0x4c9   :  { %v347_v58 = vpop.permute.xlu1 %346 }
 0x4ca   :  { %v354_v59 = vmin.f32 %v333_v45, %v347_v58 }
 0x4cc   :  { %367 = vrot.lane.b32.xlu0 %v354_v59, %s1009_s18 }
 0x52e   :  { %v356_v60 = vpop.permute.xlu0 %355 }
 0x52f   :  { %v369_v61 = vmin.f32 %v348_v47, %v356_v60 }
 0x531   :  { %376 = vrot.lane.b32.xlu1 %v369_v61, %s1010_s19 }
 0x532   :  { %v358_v62 = vpop.permute.xlu1 %357 }
 0x533   :  { %v370_v63 = vmin.f32 %v349_v49, %v358_v62 }
 0x535   :  { %378 = vrot.lane.b32.xlu0 %v370_v63, %s1010_s19 }
 0x536   :  { %v360_v0 = vpop.permute.xlu0 %359  ;;  %v362_v3 = vpop.permute.xlu1 %361 }
 0x537   :  { %v371_v4 = vmin.f32 %v350_v53, %v360_v0  ;;  %v372_v5 = vmin.f32 %v351_v52, %v362_v3 }
 0x539   :  { %380 = vrot.lane.b32.xlu1 %v371_v4, %s1010_s19  ;;  %382 = vrot.lane.b32.xlu0 %v372_v5, %s1010_s19 }
 0x53a   :  { %v364_v6 = vpop.permute.xlu0 %363  ;;  %v366_v8 = vpop.permute.xlu1 %365 }
 0x53b   :  { %v373_v9 = vmin.f32 %v352_v57, %v364_v6  ;;  %v374_v11 = vmin.f32 %v353_v56, %v366_v8 }
 0x53d   :  { %384 = vrot.lane.b32.xlu1 %v373_v9, %s1010_s19  ;;  %386 = vrot.lane.b32.xlu0 %v374_v11, %s1010_s19 }
 0x53e   :  { %v368_v12 = vpop.permute.xlu0 %367 }
 0x53f   :  { %v375_v13 = vmin.f32 %v354_v59, %v368_v12 }
 0x541   :  { %388 = vrot.lane.b32.xlu1 %v375_v13, %s1010_s19 }
 0x5a3   :  { %v377_v14 = vpop.permute.xlu1 %376 }
 0x5a4   :  { %v390_v15 = vmin.f32 %v369_v61, %v377_v14 }
 0x5a6   :  { %397 = vrot.lane.b32.xlu0 %v390_v15, %s1009_s18 }
 0x5a7   :  { %v379_v16 = vpop.permute.xlu0 %378 }
 0x5a8   :  { %v391_v17 = vmin.f32 %v370_v63, %v379_v16 }
 0x5aa   :  { %399 = vrot.lane.b32.xlu1 %v391_v17, %s1009_s18 }
 0x5ab   :  { %v383_v18 = vpop.permute.xlu0 %382  ;;  %v381_v19 = vpop.permute.xlu1 %380 }
 0x5ac   :  { %v393_v21 = vmin.f32 %v372_v5, %v383_v18  ;;  %v392_v22 = vmin.f32 %v371_v4, %v381_v19 }
 0x5ae   :  { %403 = vrot.lane.b32.xlu1 %v393_v21, %s1009_s18  ;;  %401 = vrot.lane.b32.xlu0 %v392_v22, %s1009_s18 }
 0x5af   :  { %v387_v23 = vpop.permute.xlu0 %386  ;;  %v385_v24 = vpop.permute.xlu1 %384 }
 0x5b0   :  { %v395_v25 = vmin.f32 %v374_v11, %v387_v23  ;;  %v394_v26 = vmin.f32 %v373_v9, %v385_v24 }
 0x5b2   :  { %407 = vrot.lane.b32.xlu1 %v395_v25, %s1009_s18  ;;  %405 = vrot.lane.b32.xlu0 %v394_v26, %s1009_s18 }
 0x5b3   :  { %v389_v27 = vpop.permute.xlu1 %388 }
 0x5b4   :  { %v396_v7 = vmin.f32 %v375_v13, %v389_v27 }
 0x5b6   :  { %409 = vrot.lane.b32.xlu0 %v396_v7, %s1009_s18 }
 0x618   :  { %v398_v28 = vpop.permute.xlu0 %397 }
 0x619   :  { %v411_v29 = vmin.f32 %v390_v15, %v398_v28 }
 0x61b   :  { %v418_v32 = vrot.slane %v411_v29, 1 }
 0x61c   :  { %v400_v30 = vpop.permute.xlu1 %399 }
 0x61d   :  { %v412_v31 = vmin.f32 %v391_v17, %v400_v30 }
 0x61f   :  { %v419_v33 = vrot.slane %v412_v31, 1 }
 0x620   :  { %v402_v34 = vpop.permute.xlu0 %401  ;;  %v404_v35 = vpop.permute.xlu1 %403 }
 0x621   :  { %v430_v36 = vsel %vm254_vm11, %v418_v32, %v419_v33  ;;  %v413_v10 = vmin.f32 %v392_v22, %v402_v34  ;;  %v414_v37 = vmin.f32 %v393_v21, %v404_v35 }
 0x622   :  { %v432_v39 = vmin.f32 %v411_v29, %v430_v36 }
 0x623   :  { %v420_v38 = vrot.slane %v413_v10, 1  ;;  %v421_v20 = vrot.slane %v414_v37, 1 }
 0x624   :  { %v406_v40 = vpop.permute.xlu0 %405  ;;  %v408_v41 = vpop.permute.xlu1 %407  ;;  %v439_v50 = vrot.slane %v432_v39, 2 }
 0x625   :  { %v429_v42 = vsel %vm254_vm11, %v419_v33, %v420_v38  ;;  %v428_v43 = vsel %vm254_vm11, %v420_v38, %v421_v20  ;;  %v415_v44 = vmin.f32 %v394_v26, %v406_v40  ;;  %v416_v45 = vmin.f32 %v395_v25, %v408_v41 }
 0x626   :  { %v433_v46 = vmin.f32 %v412_v31, %v429_v42  ;;  %v434_v47 = vmin.f32 %v413_v10, %v428_v43 }
 0x627   :  { %v422_v48 = vrot.slane %v415_v44, 1  ;;  %v423_v49 = vrot.slane %v416_v45, 1 }
 0x628   :  { %v440_v51 = vrot.slane %v433_v46, 2  ;;  %v441_v52 = vrot.slane %v434_v47, 2  ;;  %v410_v53 = vpop.permute.xlu0 %409 }
 0x629   :  { %v427_v54 = vsel %vm254_vm11, %v421_v20, %v422_v48  ;;  %v426_v55 = vsel %vm254_vm11, %v422_v48, %v423_v49  ;;  %v417_v56 = vmin.f32 %v396_v7, %v410_v53 }
 0x62a   :  { %v451_v57 = vsel %vm276_vm12, %v439_v50, %v440_v51  ;;  %v435_v58 = vmin.f32 %v414_v37, %v427_v54  ;;  %v436_v59 = vmin.f32 %v415_v44, %v426_v55  ;;  %v450_v60 = vsel %vm276_vm12, %v440_v51, %v441_v52 }
 0x62b   :  { %v424_v61 = vrot.slane %v417_v56, 1  ;;  %v453_v62 = vmin.f32 %v432_v39, %v451_v57  ;;  %v454_v63 = vmin.f32 %v433_v46, %v450_v60 }
 0x62c   :  { %v442_v0 = vrot.slane %v435_v58, 2  ;;  %v443_v3 = vrot.slane %v436_v59, 2 }
 0x62d   :  { %v425_v4 = vsel %vm254_vm11, %v423_v49, %v424_v61  ;;  %v431_v5 = vsel %vm254_vm11, %v424_v61, %v418_v32  ;;  %v460_v6 = vrot.slane %v453_v62, 4  ;;  %v461_v8 = vrot.slane %v454_v63, 4 }
 0x62e   :  { %v449_v9 = vsel %vm276_vm12, %v441_v52, %v442_v0  ;;  %v448_v11 = vsel %vm276_vm12, %v442_v0, %v443_v3  ;;  %v437_v12 = vmin.f32 %v416_v45, %v425_v4  ;;  %v438_v13 = vmin.f32 %v417_v56, %v431_v5 }
 0x62f   :  { %v455_v14 = vmin.f32 %v434_v47, %v449_v9  ;;  %v456_v15 = vmin.f32 %v435_v58, %v448_v11  ;;  %v472_v16 = vsel %vm298_vm13, %v460_v6, %v461_v8 }
 0x630   :  { %v444_v17 = vrot.slane %v437_v12, 2  ;;  %v445_v18 = vrot.slane %v438_v13, 2  ;;  %v474_v25 = vmin.f32 %v453_v62, %v472_v16 }
 0x631   :  { %v462_v19 = vrot.slane %v455_v14, 4  ;;  %v463_v21 = vrot.slane %v456_v15, 4 }
 0x632   :  { %v446_v22 = vsel %vm276_vm12, %v444_v17, %v445_v18  ;;  %v447_v23 = vsel %vm276_vm12, %v443_v3, %v444_v17  ;;  %v452_v24 = vsel %vm276_vm12, %v445_v18, %v439_v50  ;;  %v481_v35 = vrot.slane %v474_v25, 2 }
 0x633   :  { %v457_v26 = vmin.f32 %v436_v59, %v447_v23  ;;  %v458_v27 = vmin.f32 %v437_v12, %v446_v22  ;;  %v459_v7 = vmin.f32 %v438_v13, %v452_v24  ;;  %v471_v28 = vsel %vm298_vm13, %v461_v8, %v462_v19 }
 0x634   :  { %v475_v29 = vmin.f32 %v454_v63, %v471_v28  ;;  %v470_v30 = vsel %vm298_vm13, %v462_v19, %v463_v21 }
 0x635   :  { %v465_v31 = vrot.slane %v458_v27, 4  ;;  %v466_v32 = vrot.slane %v459_v7, 4  ;;  %v476_v33 = vmin.f32 %v455_v14, %v470_v30  ;;  %v464_v34 = vrot.slane %v457_v26, 4 }
 0x636   :  { %v482_v36 = vrot.slane %v475_v29, 2 }
 0x637   :  { %v467_v10 = vsel %vm298_vm13, %v465_v31, %v466_v32  ;;  %v473_v37 = vsel %vm298_vm13, %v466_v32, %v460_v6  ;;  %v483_v38 = vrot.slane %v476_v33, 2  ;;  %v469_v20 = vsel %vm298_vm13, %v463_v21, %v464_v34 }
 0x638   :  { %v480_v39 = vmin.f32 %v459_v7, %v473_v37  ;;  %v493_v40 = vsel %vm276_vm12, %v481_v35, %v482_v36  ;;  %v477_v41 = vmin.f32 %v456_v15, %v469_v20  ;;  %v468_v42 = vsel %vm298_vm13, %v464_v34, %v465_v31 }
 0x639   :  { %v495_v43 = vmin.f32 %v474_v25, %v493_v40  ;;  %v492_v44 = vsel %vm276_vm12, %v482_v36, %v483_v38  ;;  %v478_v45 = vmin.f32 %v457_v26, %v468_v42  ;;  %v479_v46 = vmin.f32 %v458_v27, %v467_v10 }
 0x63a   :  { %v496_v47 = vmin.f32 %v475_v29, %v492_v44  ;;  %v484_v48 = vrot.slane %v477_v41, 2  ;;  %v487_v49 = vrot.slane %v480_v39, 2 }
 0x63b   :  { %502 = vrot.lane.b32.xlu1 %v495_v43, %s1008_s17  ;;  %v485_v50 = vrot.slane %v478_v45, 2  ;;  %v486_v51 = vrot.slane %v479_v46, 2 }
 0x63c   :  { %504 = vrot.lane.b32.xlu0 %v496_v47, %s1008_s17  ;;  %v491_v52 = vsel %vm276_vm12, %v483_v38, %v484_v48  ;;  %v494_v60 = vsel %vm276_vm12, %v487_v49, %v481_v35 }
 0x63d   :  { %v497_v53 = vmin.f32 %v476_v33, %v491_v52  ;;  %v490_v54 = vsel %vm276_vm12, %v484_v48, %v485_v50  ;;  %v489_v56 = vsel %vm276_vm12, %v485_v50, %v486_v51  ;;  %v488_v57 = vsel %vm276_vm12, %v486_v51, %v487_v49 }
 0x63e   :  { %v498_v55 = vmin.f32 %v477_v41, %v490_v54  ;;  %v499_v58 = vmin.f32 %v478_v45, %v489_v56  ;;  %v500_v59 = vmin.f32 %v479_v46, %v488_v57  ;;  %v501_v61 = vmin.f32 %v480_v39, %v494_v60 }
 0x63f   :  { %506 = vrot.lane.b32.xlu1 %v497_v53, %s1008_s17 }
 0x640   :  { %508 = vrot.lane.b32.xlu0 %v498_v55, %s1008_s17 }
 0x643   :  { %510 = vrot.lane.b32.xlu1 %v499_v58, %s1008_s17 }
 0x644   :  { %512 = vrot.lane.b32.xlu0 %v500_v59, %s1008_s17 }
 0x647   :  { %514 = vrot.lane.b32.xlu1 %v501_v61, %s1008_s17 }
 0x6ad   :  { %v503_v62 = vpop.permute.xlu1 %502 }
 0x6ae   :  { %v505_v63 = vpop.permute.xlu0 %504  ;;  %v516_v0 = vmax.f32 %v495_v43, %v503_v62 }
 0x6af   :  { %v517_v3 = vmax.f32 %v496_v47, %v505_v63 }
 0x6b0   :  { %523 = vrot.lane.b32.xlu0 %v516_v0, %s1009_s18 }
 0x6b1   :  { %525 = vrot.lane.b32.xlu1 %v517_v3, %s1009_s18  ;;  %v507_v4 = vpop.permute.xlu1 %506 }
 0x6b2   :  { %v509_v5 = vpop.permute.xlu0 %508  ;;  %v518_v6 = vmax.f32 %v497_v53, %v507_v4 }
 0x6b3   :  { %v519_v8 = vmax.f32 %v498_v55, %v509_v5 }
 0x6b4   :  { %527 = vrot.lane.b32.xlu0 %v518_v6, %s1009_s18 }
 0x6b5   :  { %529 = vrot.lane.b32.xlu1 %v519_v8, %s1009_s18  ;;  %v511_v9 = vpop.permute.xlu1 %510 }
 0x6b6   :  { %v513_v11 = vpop.permute.xlu0 %512  ;;  %v520_v12 = vmax.f32 %v499_v58, %v511_v9 }
 0x6b7   :  { %v521_v13 = vmax.f32 %v500_v59, %v513_v11 }
 0x6b8   :  { %531 = vrot.lane.b32.xlu0 %v520_v12, %s1009_s18 }
 0x6b9   :  { %533 = vrot.lane.b32.xlu1 %v521_v13, %s1009_s18  ;;  %v515_v14 = vpop.permute.xlu1 %514 }
 0x6ba   :  { %v522_v15 = vmax.f32 %v501_v61, %v515_v14 }
 0x6bc   :  { %535 = vrot.lane.b32.xlu0 %v522_v15, %s1009_s18 }
 0x722   :  { %v524_v16 = vpop.permute.xlu0 %523 }
 0x723   :  { %v537_v17 = vmax.f32 %v516_v0, %v524_v16  ;;  %v526_v18 = vpop.permute.xlu1 %525 }
 0x724   :  { %v538_v19 = vmax.f32 %v517_v3, %v526_v18 }
 0x725   :  { %544 = vrot.lane.b32.xlu1 %v537_v17, %s1010_s19 }
 0x726   :  { %546 = vrot.lane.b32.xlu0 %v538_v19, %s1010_s19  ;;  %v528_v21 = vpop.permute.xlu0 %527 }
 0x727   :  { %v539_v22 = vmax.f32 %v518_v6, %v528_v21  ;;  %v530_v23 = vpop.permute.xlu1 %529 }
 0x728   :  { %v540_v24 = vmax.f32 %v519_v8, %v530_v23 }
 0x729   :  { %548 = vrot.lane.b32.xlu1 %v539_v22, %s1010_s19 }
 0x72a   :  { %550 = vrot.lane.b32.xlu0 %v540_v24, %s1010_s19  ;;  %v532_v25 = vpop.permute.xlu0 %531 }
 0x72b   :  { %v541_v26 = vmax.f32 %v520_v12, %v532_v25  ;;  %v534_v27 = vpop.permute.xlu1 %533 }
 0x72c   :  { %v542_v7 = vmax.f32 %v521_v13, %v534_v27 }
 0x72d   :  { %552 = vrot.lane.b32.xlu1 %v541_v26, %s1010_s19 }
 0x72e   :  { %554 = vrot.lane.b32.xlu0 %v542_v7, %s1010_s19  ;;  %v536_v28 = vpop.permute.xlu0 %535 }
 0x72f   :  { %v543_v29 = vmax.f32 %v522_v15, %v536_v28 }
 0x731   :  { %556 = vrot.lane.b32.xlu1 %v543_v29, %s1010_s19 }
 0x797   :  { %v545_v30 = vpop.permute.xlu1 %544 }
 0x798   :  { %v547_v31 = vpop.permute.xlu0 %546  ;;  %v558_v32 = vmax.f32 %v537_v17, %v545_v30 }
 0x799   :  { %v559_v33 = vmax.f32 %v538_v19, %v547_v31 }
 0x79a   :  { %565 = vrot.lane.b32.xlu0 %v558_v32, %s1009_s18 }
 0x79b   :  { %567 = vrot.lane.b32.xlu1 %v559_v33, %s1009_s18  ;;  %v549_v34 = vpop.permute.xlu1 %548 }
 0x79c   :  { %v551_v35 = vpop.permute.xlu0 %550  ;;  %v560_v36 = vmax.f32 %v539_v22, %v549_v34 }
 0x79d   :  { %v561_v10 = vmax.f32 %v540_v24, %v551_v35 }
 0x79e   :  { %569 = vrot.lane.b32.xlu0 %v560_v36, %s1009_s18 }
 0x79f   :  { %571 = vrot.lane.b32.xlu1 %v561_v10, %s1009_s18  ;;  %v553_v37 = vpop.permute.xlu1 %552 }
 0x7a0   :  { %v555_v38 = vpop.permute.xlu0 %554  ;;  %v562_v20 = vmax.f32 %v541_v26, %v553_v37 }
 0x7a1   :  { %v563_v39 = vmax.f32 %v542_v7, %v555_v38 }
 0x7a2   :  { %573 = vrot.lane.b32.xlu0 %v562_v20, %s1009_s18 }
 0x7a3   :  { %575 = vrot.lane.b32.xlu1 %v563_v39, %s1009_s18  ;;  %v557_v40 = vpop.permute.xlu1 %556 }
 0x7a4   :  { %v564_v41 = vmax.f32 %v543_v29, %v557_v40 }
 0x7a6   :  { %577 = vrot.lane.b32.xlu0 %v564_v41, %s1009_s18 }
 0x80c   :  { %v566_v42 = vpop.permute.xlu0 %565 }
 0x80d   :  { %v579_v43 = vmax.f32 %v558_v32, %v566_v42  ;;  %v568_v44 = vpop.permute.xlu1 %567 }
 0x80e   :  { %v580_v45 = vmax.f32 %v559_v33, %v568_v44 }
 0x80f   :  { %v586_v46 = vrot.slane %v579_v43, 1 }
 0x810   :  { %v587_v47 = vrot.slane %v580_v45, 1  ;;  %v570_v48 = vpop.permute.xlu0 %569 }
 0x811   :  { %v581_v49 = vmax.f32 %v560_v36, %v570_v48  ;;  %v572_v50 = vpop.permute.xlu1 %571 }
 0x812   :  { %v598_v51 = vsel %vm254_vm11, %v586_v46, %v587_v47  ;;  %v582_v52 = vmax.f32 %v561_v10, %v572_v50 }
 0x813   :  { %v588_v53 = vrot.slane %v581_v49, 1  ;;  %v600_v54 = vmax.f32 %v579_v43, %v598_v51 }
 0x814   :  { %v589_v55 = vrot.slane %v582_v52, 1  ;;  %v574_v56 = vpop.permute.xlu0 %573 }
 0x815   :  { %v597_v57 = vsel %vm254_vm11, %v587_v47, %v588_v53  ;;  %v583_v58 = vmax.f32 %v562_v20, %v574_v56  ;;  %v576_v59 = vpop.permute.xlu1 %575  ;;  %v607_v3 = vrot.slane %v600_v54, 2 }
 0x816   :  { %v601_v60 = vmax.f32 %v580_v45, %v597_v57  ;;  %v596_v61 = vsel %vm254_vm11, %v588_v53, %v589_v55  ;;  %v584_v62 = vmax.f32 %v563_v39, %v576_v59 }
 0x817   :  { %v602_v63 = vmax.f32 %v581_v49, %v596_v61  ;;  %v590_v0 = vrot.slane %v583_v58, 1 }
 0x818   :  { %v608_v4 = vrot.slane %v601_v60, 2  ;;  %v591_v5 = vrot.slane %v584_v62, 1  ;;  %v578_v6 = vpop.permute.xlu0 %577 }
 0x819   :  { %v609_v8 = vrot.slane %v602_v63, 2  ;;  %v595_v9 = vsel %vm254_vm11, %v589_v55, %v590_v0  ;;  %v585_v11 = vmax.f32 %v564_v41, %v578_v6 }
 0x81a   :  { %v619_v12 = vsel %vm276_vm12, %v607_v3, %v608_v4  ;;  %v603_v13 = vmax.f32 %v582_v52, %v595_v9  ;;  %v594_v14 = vsel %vm254_vm11, %v590_v0, %v591_v5 }
 0x81b   :  { %v604_v15 = vmax.f32 %v583_v58, %v594_v14  ;;  %v592_v16 = vrot.slane %v585_v11, 1  ;;  %v621_v17 = vmax.f32 %v600_v54, %v619_v12  ;;  %v618_v18 = vsel %vm276_vm12, %v608_v4, %v609_v8 }
 0x81c   :  { %v610_v19 = vrot.slane %v603_v13, 2  ;;  %v622_v21 = vmax.f32 %v601_v60, %v618_v18 }
 0x81d   :  { %v611_v22 = vrot.slane %v604_v15, 2  ;;  %v593_v23 = vsel %vm254_vm11, %v591_v5, %v592_v16  ;;  %v599_v24 = vsel %vm254_vm11, %v592_v16, %v586_v46  ;;  %v628_v25 = vrot.slane %v621_v17, 4 }
 0x81e   :  { %v617_v26 = vsel %vm276_vm12, %v609_v8, %v610_v19  ;;  %v605_v27 = vmax.f32 %v584_v62, %v593_v23  ;;  %v606_v7 = vmax.f32 %v585_v11, %v599_v24  ;;  %v629_v28 = vrot.slane %v622_v21, 4 }
 0x81f   :  { %v623_v29 = vmax.f32 %v602_v63, %v617_v26  ;;  %v616_v30 = vsel %vm276_vm12, %v610_v19, %v611_v22 }
 0x820   :  { %v624_v31 = vmax.f32 %v603_v13, %v616_v30  ;;  %v612_v32 = vrot.slane %v605_v27, 2  ;;  %v613_v33 = vrot.slane %v606_v7, 2  ;;  %v640_v34 = vsel %vm298_vm13, %v628_v25, %v629_v28 }
 0x821   :  { %v630_v35 = vrot.slane %v623_v29, 4  ;;  %v642_v36 = vmax.f32 %v621_v17, %v640_v34 }
 0x822   :  { %v614_v10 = vsel %vm276_vm12, %v612_v32, %v613_v33  ;;  %v615_v37 = vsel %vm276_vm12, %v611_v22, %v612_v32  ;;  %v620_v38 = vsel %vm276_vm12, %v613_v33, %v607_v3  ;;  %v631_v20 = vrot.slane %v624_v31, 4 }
 0x823   :  { %v625_v39 = vmax.f32 %v604_v15, %v615_v37  ;;  %v626_v40 = vmax.f32 %v605_v27, %v614_v10  ;;  %v627_v41 = vmax.f32 %v606_v7, %v620_v38  ;;  %v639_v42 = vsel %vm298_vm13, %v629_v28, %v630_v35 }
 0x824   :  { %v643_v43 = vmax.f32 %v622_v21, %v639_v42  ;;  %v638_v44 = vsel %vm298_vm13, %v630_v35, %v631_v20  ;;  %v649_v49 = vrot.slane %v642_v36, 2 }
 0x825   :  { %v633_v45 = vrot.slane %v626_v40, 4  ;;  %v634_v46 = vrot.slane %v627_v41, 4  ;;  %v644_v47 = vmax.f32 %v623_v29, %v638_v44  ;;  %v632_v48 = vrot.slane %v625_v39, 4 }
 0x826   :  { %v650_v50 = vrot.slane %v643_v43, 2 }
 0x827   :  { %v635_v51 = vsel %vm298_vm13, %v633_v45, %v634_v46  ;;  %v641_v52 = vsel %vm298_vm13, %v634_v46, %v628_v25  ;;  %v651_v53 = vrot.slane %v644_v47, 2  ;;  %v637_v54 = vsel %vm298_vm13, %v631_v20, %v632_v48 }
 0x828   :  { %v648_v55 = vmax.f32 %v627_v41, %v641_v52  ;;  %v661_v56 = vsel %vm276_vm12, %v649_v49, %v650_v50  ;;  %v645_v57 = vmax.f32 %v624_v31, %v637_v54  ;;  %v636_v58 = vsel %vm298_vm13, %v632_v48, %v633_v45 }
 0x829   :  { %v663_v59 = vmax.f32 %v642_v36, %v661_v56  ;;  %v660_v60 = vsel %vm276_vm12, %v650_v50, %v651_v53  ;;  %v646_v61 = vmax.f32 %v625_v39, %v636_v58  ;;  %v647_v62 = vmax.f32 %v626_v40, %v635_v51 }
 0x82a   :  { %v664_v63 = vmax.f32 %v643_v43, %v660_v60  ;;  %v652_v0 = vrot.slane %v645_v57, 2  ;;  %v655_v3 = vrot.slane %v648_v55, 2 }
 0x82b   :  { %670 = vrot.lane.b32.xlu1 %v663_v59, %s1008_s17  ;;  %v653_v4 = vrot.slane %v646_v61, 2  ;;  %v654_v5 = vrot.slane %v647_v62, 2 }
 0x82c   :  { %672 = vrot.lane.b32.xlu0 %v664_v63, %s1008_s17  ;;  %v659_v6 = vsel %vm276_vm12, %v651_v53, %v652_v0  ;;  %v662_v16 = vsel %vm276_vm12, %v655_v3, %v649_v49 }
 0x82d   :  { %v665_v8 = vmax.f32 %v644_v47, %v659_v6  ;;  %v658_v9 = vsel %vm276_vm12, %v652_v0, %v653_v4  ;;  %v657_v12 = vsel %vm276_vm12, %v653_v4, %v654_v5  ;;  %v656_v13 = vsel %vm276_vm12, %v654_v5, %v655_v3 }
 0x82e   :  { %v666_v11 = vmax.f32 %v645_v57, %v658_v9  ;;  %v667_v14 = vmax.f32 %v646_v61, %v657_v12  ;;  %v668_v15 = vmax.f32 %v647_v62, %v656_v13  ;;  %v669_v17 = vmax.f32 %v648_v55, %v662_v16 }
 0x82f   :  { %674 = vrot.lane.b32.xlu1 %v665_v8, %s1008_s17 }
 0x830   :  { %676 = vrot.lane.b32.xlu0 %v666_v11, %s1008_s17 }
 0x833   :  { %678 = vrot.lane.b32.xlu1 %v667_v14, %s1008_s17 }
 0x834   :  { %680 = vrot.lane.b32.xlu0 %v668_v15, %s1008_s17 }
 0x837   :  { %682 = vrot.lane.b32.xlu1 %v669_v17, %s1008_s17 }
 0x89d   :  { %v671_v18 = vpop.permute.xlu1 %670 }
 0x89e   :  { %v673_v19 = vpop.permute.xlu0 %672  ;;  %v684_v21 = vmax.f32 %v663_v59, %v671_v18 }
 0x89f   :  { %v685_v22 = vmax.f32 %v664_v63, %v673_v19 }
 0x8a0   :  { %691 = vrot.lane.b32.xlu0 %v684_v21, %s1009_s18 }
 0x8a1   :  { %693 = vrot.lane.b32.xlu1 %v685_v22, %s1009_s18  ;;  %v675_v23 = vpop.permute.xlu1 %674 }
 0x8a2   :  { %v677_v24 = vpop.permute.xlu0 %676  ;;  %v686_v25 = vmax.f32 %v665_v8, %v675_v23 }
 0x8a3   :  { %v687_v26 = vmax.f32 %v666_v11, %v677_v24 }
 0x8a4   :  { %695 = vrot.lane.b32.xlu0 %v686_v25, %s1009_s18 }
 0x8a5   :  { %697 = vrot.lane.b32.xlu1 %v687_v26, %s1009_s18  ;;  %v679_v27 = vpop.permute.xlu1 %678 }
 0x8a6   :  { %v681_v7 = vpop.permute.xlu0 %680  ;;  %v688_v28 = vmax.f32 %v667_v14, %v679_v27 }
 0x8a7   :  { %v689_v29 = vmax.f32 %v668_v15, %v681_v7 }
 0x8a8   :  { %699 = vrot.lane.b32.xlu0 %v688_v28, %s1009_s18 }
 0x8a9   :  { %701 = vrot.lane.b32.xlu1 %v689_v29, %s1009_s18  ;;  %v683_v30 = vpop.permute.xlu1 %682 }
 0x8aa   :  { %v690_v31 = vmax.f32 %v669_v17, %v683_v30 }
 0x8ac   :  { %703 = vrot.lane.b32.xlu0 %v690_v31, %s1009_s18 }
 0x912   :  { %v692_v32 = vpop.permute.xlu0 %691 }
 0x913   :  { %v705_v33 = vmax.f32 %v684_v21, %v692_v32  ;;  %v694_v34 = vpop.permute.xlu1 %693 }
 0x914   :  { %v706_v35 = vmax.f32 %v685_v22, %v694_v34 }
 0x915   :  { %712 = vrot.lane.b32.xlu1 %v705_v33, %s1010_s19 }
 0x916   :  { %714 = vrot.lane.b32.xlu0 %v706_v35, %s1010_s19  ;;  %v696_v36 = vpop.permute.xlu0 %695 }
 0x917   :  { %v707_v10 = vmax.f32 %v686_v25, %v696_v36  ;;  %v698_v37 = vpop.permute.xlu1 %697 }
 0x918   :  { %v708_v38 = vmax.f32 %v687_v26, %v698_v37 }
 0x919   :  { %716 = vrot.lane.b32.xlu1 %v707_v10, %s1010_s19 }
 0x91a   :  { %718 = vrot.lane.b32.xlu0 %v708_v38, %s1010_s19  ;;  %v700_v20 = vpop.permute.xlu0 %699 }
 0x91b   :  { %v709_v39 = vmax.f32 %v688_v28, %v700_v20  ;;  %v702_v40 = vpop.permute.xlu1 %701 }
 0x91c   :  { %v710_v41 = vmax.f32 %v689_v29, %v702_v40 }
 0x91d   :  { %720 = vrot.lane.b32.xlu1 %v709_v39, %s1010_s19 }
 0x91e   :  { %722 = vrot.lane.b32.xlu0 %v710_v41, %s1010_s19  ;;  %v704_v42 = vpop.permute.xlu0 %703 }
 0x91f   :  { %v711_v43 = vmax.f32 %v690_v31, %v704_v42 }
 0x921   :  { %724 = vrot.lane.b32.xlu1 %v711_v43, %s1010_s19 }
 0x987   :  { %v713_v44 = vpop.permute.xlu1 %712 }
 0x988   :  { %v715_v45 = vpop.permute.xlu0 %714  ;;  %v726_v46 = vmax.f32 %v705_v33, %v713_v44 }
 0x989   :  { %v727_v47 = vmax.f32 %v706_v35, %v715_v45 }
 0x98a   :  { %733 = vrot.lane.b32.xlu0 %v726_v46, %s1009_s18 }
 0x98b   :  { %735 = vrot.lane.b32.xlu1 %v727_v47, %s1009_s18  ;;  %v717_v48 = vpop.permute.xlu1 %716 }
 0x98c   :  { %v719_v49 = vpop.permute.xlu0 %718  ;;  %v728_v50 = vmax.f32 %v707_v10, %v717_v48 }
 0x98d   :  { %v729_v51 = vmax.f32 %v708_v38, %v719_v49 }
 0x98e   :  { %737 = vrot.lane.b32.xlu0 %v728_v50, %s1009_s18 }
 0x98f   :  { %739 = vrot.lane.b32.xlu1 %v729_v51, %s1009_s18  ;;  %v721_v52 = vpop.permute.xlu1 %720 }
 0x990   :  { %v723_v53 = vpop.permute.xlu0 %722  ;;  %v730_v54 = vmax.f32 %v709_v39, %v721_v52 }
 0x991   :  { %v731_v55 = vmax.f32 %v710_v41, %v723_v53 }
 0x992   :  { %741 = vrot.lane.b32.xlu0 %v730_v54, %s1009_s18 }
 0x993   :  { %743 = vrot.lane.b32.xlu1 %v731_v55, %s1009_s18  ;;  %v725_v56 = vpop.permute.xlu1 %724 }
 0x994   :  { %v732_v57 = vmax.f32 %v711_v43, %v725_v56 }
 0x996   :  { %745 = vrot.lane.b32.xlu0 %v732_v57, %s1009_s18 }
 0x9fc   :  { %v734_v58 = vpop.permute.xlu0 %733 }
 0x9fd   :  { %v747_v59 = vmax.f32 %v726_v46, %v734_v58  ;;  %v736_v60 = vpop.permute.xlu1 %735 }
 0x9fe   :  { %v748_v61 = vmax.f32 %v727_v47, %v736_v60 }
 0x9ff   :  { %v754_v62 = vrot.slane %v747_v59, 1 }
 0xa00   :  { %v755_v63 = vrot.slane %v748_v61, 1  ;;  %v738_v0 = vpop.permute.xlu0 %737 }
 0xa01   :  { %v749_v3 = vmax.f32 %v728_v50, %v738_v0  ;;  %v740_v4 = vpop.permute.xlu1 %739 }
 0xa02   :  { %v766_v5 = vsel %vm254_vm11, %v754_v62, %v755_v63  ;;  %v750_v6 = vmax.f32 %v729_v51, %v740_v4 }
 0xa03   :  { %v756_v8 = vrot.slane %v749_v3, 1  ;;  %v768_v9 = vmax.f32 %v747_v59, %v766_v5 }
 0xa04   :  { %v757_v11 = vrot.slane %v750_v6, 1  ;;  %v742_v12 = vpop.permute.xlu0 %741 }
 0xa05   :  { %v765_v13 = vsel %vm254_vm11, %v755_v63, %v756_v8  ;;  %v751_v14 = vmax.f32 %v730_v54, %v742_v12  ;;  %v744_v15 = vpop.permute.xlu1 %743  ;;  %v775_v25 = vrot.slane %v768_v9, 2 }
 0xa06   :  { %v769_v16 = vmax.f32 %v748_v61, %v765_v13  ;;  %v764_v17 = vsel %vm254_vm11, %v756_v8, %v757_v11  ;;  %v752_v18 = vmax.f32 %v731_v55, %v744_v15 }
 0xa07   :  { %v770_v19 = vmax.f32 %v749_v3, %v764_v17  ;;  %v758_v21 = vrot.slane %v751_v14, 1 }
 0xa08   :  { %v776_v22 = vrot.slane %v769_v16, 2  ;;  %v759_v23 = vrot.slane %v752_v18, 1  ;;  %v746_v24 = vpop.permute.xlu0 %745 }
 0xa09   :  { %v777_v26 = vrot.slane %v770_v19, 2  ;;  %v763_v27 = vsel %vm254_vm11, %v757_v11, %v758_v21  ;;  %v753_v7 = vmax.f32 %v732_v57, %v746_v24 }
 0xa0a   :  { %v771_v28 = vmax.f32 %v750_v6, %v763_v27  ;;  %v762_v29 = vsel %vm254_vm11, %v758_v21, %v759_v23  ;;  %v787_v30 = vsel %vm276_vm12, %v775_v25, %v776_v22 }
 0xa0b   :  { %v786_v31 = vsel %vm276_vm12, %v776_v22, %v777_v26  ;;  %v772_v32 = vmax.f32 %v751_v14, %v762_v29  ;;  %v760_v33 = vrot.slane %v753_v7, 1  ;;  %v789_v34 = vmax.f32 %v768_v9, %v787_v30 }
 0xa0c   :  { %v790_v35 = vmax.f32 %v769_v16, %v786_v31  ;;  %v778_v36 = vrot.slane %v771_v28, 2 }
 0xa0d   :  { %v779_v10 = vrot.slane %v772_v32, 2  ;;  %v761_v37 = vsel %vm254_vm11, %v759_v23, %v760_v33  ;;  %v767_v38 = vsel %vm254_vm11, %v760_v33, %v754_v62  ;;  %v796_v20 = vrot.slane %v789_v34, 4 }
 0xa0e   :  { %v785_v39 = vsel %vm276_vm12, %v777_v26, %v778_v36  ;;  %v773_v40 = vmax.f32 %v752_v18, %v761_v37  ;;  %v774_v41 = vmax.f32 %v753_v7, %v767_v38  ;;  %v797_v42 = vrot.slane %v790_v35, 4 }
 0xa0f   :  { %v791_v43 = vmax.f32 %v770_v19, %v785_v39  ;;  %v784_v44 = vsel %vm276_vm12, %v778_v36, %v779_v10 }
 0xa10   :  { %v792_v45 = vmax.f32 %v771_v28, %v784_v44  ;;  %v780_v46 = vrot.slane %v773_v40, 2  ;;  %v781_v47 = vrot.slane %v774_v41, 2  ;;  %v808_v48 = vsel %vm298_vm13, %v796_v20, %v797_v42 }
 0xa11   :  { %v798_v49 = vrot.slane %v791_v43, 4  ;;  %v809_v50 = vmax.f32 %v789_v34, %v808_v48 }
 0xa12   :  { %v799_v51 = vrot.slane %v792_v45, 4  ;;  %v782_v52 = vsel %vm276_vm12, %v780_v46, %v781_v47  ;;  %v783_v53 = vsel %vm276_vm12, %v779_v10, %v780_v46  ;;  %v788_v54 = vsel %vm276_vm12, %v781_v47, %v775_v25 }
 0xa13   :  { %v793_v55 = vmax.f32 %v772_v32, %v783_v53  ;;  %v794_v56 = vmax.f32 %v773_v40, %v782_v52  ;;  %v795_v57 = vmax.f32 %v774_v41, %v788_v54  ;;  %v807_v58 = vsel %vm298_vm13, %v797_v42, %v798_v49 }
 0xa14   :  { %v810_v59 = vmax.f32 %v790_v35, %v807_v58  ;;  %v806_v60 = vsel %vm298_vm13, %v798_v49, %v799_v51  ;;  %v815_v3 = vrot.slane %v809_v50, 2 }
 0xa15   :  { %v800_v61 = vrot.slane %v793_v55, 4  ;;  %v801_v62 = vrot.slane %v794_v56, 4  ;;  %v802_v63 = vrot.slane %v795_v57, 4  ;;  %v811_v0 = vmax.f32 %v791_v43, %v806_v60 }
 0xa16   :  { %v816_v4 = vrot.slane %v810_v59, 2 }
 0xa17   :  { %v803_v5 = vsel %vm298_vm13, %v801_v62, %v802_v63  ;;  %v817_v6 = vrot.slane %v811_v0, 2  ;;  %v805_v8 = vsel %vm298_vm13, %v799_v51, %v800_v61  ;;  %v804_v9 = vsel %vm298_vm13, %v800_v61, %v801_v62 }
 0xa18   :  { %v814_v11 = vmax.f32 %v794_v56, %v803_v5  ;;  %v825_v12 = vsel %vm276_vm12, %v815_v3, %v816_v4  ;;  %v812_v13 = vmax.f32 %v792_v45, %v805_v8  ;;  %v813_v14 = vmax.f32 %v793_v55, %v804_v9 }
 0xa19   :  { %v826_v15 = vmax.f32 %v809_v50, %v825_v12  ;;  %v824_v16 = vsel %vm276_vm12, %v816_v4, %v817_v6 }
 0xa1a   :  { %v820_v17 = vrot.slane %v814_v11, 2  ;;  %v827_v18 = vmax.f32 %v810_v59, %v824_v16  ;;  %v818_v19 = vrot.slane %v812_v13, 2  ;;  %v819_v21 = vrot.slane %v813_v14, 2 }
 0xa1b   :  { %831 = vrot.lane.b32.xlu1 %v826_v15, %s1008_s17 }
 0xa1c   :  { %833 = vrot.lane.b32.xlu0 %v827_v18, %s1008_s17  ;;  %v823_v22 = vsel %vm276_vm12, %v817_v6, %v818_v19  ;;  %v822_v23 = vsel %vm276_vm12, %v818_v19, %v819_v21  ;;  %v821_v26 = vsel %vm276_vm12, %v819_v21, %v820_v17 }
 0xa1d   :  { %v828_v24 = vmax.f32 %v811_v0, %v823_v22  ;;  %v829_v25 = vmax.f32 %v812_v13, %v822_v23  ;;  %v830_v27 = vmax.f32 %v813_v14, %v821_v26 }
 0xa1f   :  { %835 = vrot.lane.b32.xlu1 %v828_v24, %s1008_s17 }
 0xa20   :  { %837 = vrot.lane.b32.xlu0 %v829_v25, %s1008_s17 }
 0xa23   :  { %839 = vrot.lane.b32.xlu1 %v830_v27, %s1008_s17 }
 0xa8d   :  { %v832_v7 = vpop.permute.xlu1 %831 }
 0xa8e   :  { %v834_v28 = vpop.permute.xlu0 %833  ;;  %v841_v29 = vadd.f32 %v832_v7, %v826_v15 }
 0xa8f   :  { %v842_v30 = vadd.f32 %v834_v28, %v827_v18 }
 0xa90   :  { %846 = vrot.lane.b32.xlu0 %v841_v29, %s1009_s18 }
 0xa91   :  { %848 = vrot.lane.b32.xlu1 %v842_v30, %s1009_s18  ;;  %v836_v31 = vpop.permute.xlu1 %835 }
 0xa92   :  { %v838_v32 = vpop.permute.xlu0 %837  ;;  %v843_v33 = vadd.f32 %v836_v31, %v828_v24 }
 0xa93   :  { %v844_v34 = vadd.f32 %v838_v32, %v829_v25 }
 0xa94   :  { %850 = vrot.lane.b32.xlu0 %v843_v33, %s1009_s18 }
 0xa95   :  { %852 = vrot.lane.b32.xlu1 %v844_v34, %s1009_s18  ;;  %v840_v35 = vpop.permute.xlu1 %839 }
 0xa96   :  { %v845_v36 = vadd.f32 %v840_v35, %v830_v27 }
 0xa98   :  { %854 = vrot.lane.b32.xlu0 %v845_v36, %s1009_s18 }
 0xb02   :  { %v847_v10 = vpop.permute.xlu0 %846 }
 0xb03   :  { %v856_v37 = vadd.f32 %v847_v10, %v841_v29  ;;  %v849_v38 = vpop.permute.xlu1 %848 }
 0xb04   :  { %v857_v20 = vadd.f32 %v849_v38, %v842_v30 }
 0xb05   :  { %861 = vrot.lane.b32.xlu1 %v856_v37, %s1010_s19 }
 0xb06   :  { %863 = vrot.lane.b32.xlu0 %v857_v20, %s1010_s19  ;;  %v851_v39 = vpop.permute.xlu0 %850 }
 0xb07   :  { %v858_v40 = vadd.f32 %v851_v39, %v843_v33  ;;  %v853_v41 = vpop.permute.xlu1 %852 }
 0xb08   :  { %v859_v42 = vadd.f32 %v853_v41, %v844_v34 }
 0xb09   :  { %865 = vrot.lane.b32.xlu1 %v858_v40, %s1010_s19 }
 0xb0a   :  { %867 = vrot.lane.b32.xlu0 %v859_v42, %s1010_s19  ;;  %v855_v43 = vpop.permute.xlu0 %854 }
 0xb0b   :  { %v860_v44 = vadd.f32 %v855_v43, %v845_v36 }
 0xb0d   :  { %869 = vrot.lane.b32.xlu1 %v860_v44, %s1010_s19 }
 0xb77   :  { %v862_v45 = vpop.permute.xlu1 %861 }
 0xb78   :  { %v864_v46 = vpop.permute.xlu0 %863  ;;  %v871_v47 = vadd.f32 %v862_v45, %v856_v37 }
 0xb79   :  { %v872_v48 = vadd.f32 %v864_v46, %v857_v20 }
 0xb7a   :  { %876 = vrot.lane.b32.xlu0 %v871_v47, %s1009_s18 }
 0xb7b   :  { %878 = vrot.lane.b32.xlu1 %v872_v48, %s1009_s18  ;;  %v866_v49 = vpop.permute.xlu1 %865 }
 0xb7c   :  { %v868_v50 = vpop.permute.xlu0 %867  ;;  %v873_v51 = vadd.f32 %v866_v49, %v858_v40 }
 0xb7d   :  { %v874_v52 = vadd.f32 %v868_v50, %v859_v42 }
 0xb7e   :  { %880 = vrot.lane.b32.xlu0 %v873_v51, %s1009_s18 }
 0xb7f   :  { %882 = vrot.lane.b32.xlu1 %v874_v52, %s1009_s18  ;;  %v870_v53 = vpop.permute.xlu1 %869 }
 0xb80   :  { %v875_v54 = vadd.f32 %v870_v53, %v860_v44 }
 0xb82   :  { %884 = vrot.lane.b32.xlu0 %v875_v54, %s1009_s18 }
 0xbec   :  { %v877_v55 = vpop.permute.xlu0 %876 }
 0xbed   :  { %v886_v56 = vadd.f32 %v877_v55, %v841_v29  ;;  %v879_v57 = vpop.permute.xlu1 %878 }
 0xbee   :  { %v887_v58 = vadd.f32 %v879_v57, %v842_v30 }
 0xbef   :  { %v891_v59 = vrot.slane %v886_v56, 1 }
 0xbf0   :  { %v892_v60 = vrot.slane %v887_v58, 1  ;;  %v881_v61 = vpop.permute.xlu0 %880 }
 0xbf1   :  { %v888_v62 = vadd.f32 %v881_v61, %v843_v33  ;;  %v883_v63 = vpop.permute.xlu1 %882 }
 0xbf2   :  { %v899_v0 = vsel %vm254_vm11, %v891_v59, %v892_v60  ;;  %v889_v3 = vadd.f32 %v883_v63, %v844_v34 }
 0xbf3   :  { %v893_v4 = vrot.slane %v888_v62, 1  ;;  %v900_v5 = vadd.f32 %v899_v0, %v886_v56 }
 0xbf4   :  { %v894_v6 = vrot.slane %v889_v3, 1  ;;  %v885_v8 = vpop.permute.xlu0 %884 }
 0xbf5   :  { %v898_v9 = vsel %vm254_vm11, %v892_v60, %v893_v4  ;;  %v890_v11 = vadd.f32 %v885_v8, %v845_v36  ;;  %v904_v16 = vrot.slane %v900_v5, 2 }
 0xbf6   :  { %v901_v12 = vadd.f32 %v898_v9, %v887_v58  ;;  %v897_v13 = vsel %vm254_vm11, %v893_v4, %v894_v6 }
 0xbf7   :  { %v902_v14 = vadd.f32 %v897_v13, %v888_v62  ;;  %v895_v15 = vrot.slane %v890_v11, 1 }
 0xbf8   :  { %v905_v17 = vrot.slane %v901_v12, 2 }
 0xbf9   :  { %v906_v18 = vrot.slane %v902_v14, 2  ;;  %v896_v19 = vsel %vm254_vm11, %v894_v6, %v895_v15 }
 0xbfa   :  { %v910_v21 = vsel %vm276_vm12, %v904_v16, %v905_v17  ;;  %v903_v22 = vadd.f32 %v896_v19, %v889_v3 }
 0xbfb   :  { %v911_v23 = vadd.f32 %v910_v21, %v900_v5  ;;  %v909_v24 = vsel %vm276_vm12, %v905_v17, %v906_v18 }
 0xbfc   :  { %v912_v25 = vadd.f32 %v909_v24, %v901_v12  ;;  %v907_v26 = vrot.slane %v903_v22, 2 }
 0xbfd   :  { %v914_v27 = vrot.slane %v911_v23, 4 }
 0xbfe   :  { %v915_v7 = vrot.slane %v912_v25, 4  ;;  %v908_v28 = vsel %vm276_vm12, %v906_v18, %v907_v26 }
 0xbff   :  { %v913_v29 = vadd.f32 %v908_v28, %v902_v14 }
 0xc00   :  { %v918_v30 = vsel %vm298_vm13, %v914_v27, %v915_v7 }
 0xc01   :  { %v916_v31 = vrot.slane %v913_v29, 4  ;;  %v919_v32 = vadd.f32 %v918_v30, %v911_v23 }
 0xc03   :  { %v917_v33 = vsel %vm298_vm13, %v915_v7, %v916_v31  ;;  %v921_v35 = vrot.slane %v919_v32, 2 }
 0xc04   :  { %v920_v34 = vadd.f32 %v917_v33, %v912_v25 }
 0xc06   :  { %v922_v36 = vrot.slane %v920_v34, 2 }
 0xc08   :  { %v923_v10 = vsel %vm276_vm12, %v921_v35, %v922_v36 }
 0xc09   :  { %v924_v37 = vadd.f32 %v923_v10, %v900_v5 }
 0xc0b   :  { %v925_v38 = vmul.f32 0.01, %v924_v37 }
 0xc0d   :  { %vm928_vm0 = vcmp.gt.f32.partialorder %v925_v38, 0.5 }
 0xc0e   :  { %vm929_vm1 = vmand %vm927_vm15, %vm928_vm0 }
 0xc0f   :  { %v930_v20 = vsel %vm929_vm1, %v925_v38, 0.0 }
 0xc10   :  { %931 = vst [vmem:[#allocation3] sm:$0xff] %v930_v20 }
 0xc11   :  { %s1011_s20 = smov [#allocation3]  }
 0xc12   :  { %s939_s21 = sshll.u32 %s1011_s20, 4  ;;  %s940_s21 = int_to_ptr.vmem [resolvable:$true] %s939_s21 }
 0xc13   :  { %s983_s22 = scalar_lea.vmem %s940_s21, 128  ;;  %p988_p6 = scmp.lt.s32.totalorder %s940_s21, %s940_s21 }
 0xc14   :  { %p984_p5 = scmp.ne.s32.totalorder %s940_s21, %s983_s22  ;;  %p989_p7 = scmp.lt.s32.totalorder %s983_s22, %s983_s22 }
 0xc16   :  { %p990_p8 = por %p989_p7, %p988_p6 }
 0xc18   :  { %p991_p9 = pnand %p990_p8, %p984_p5 }
 0xc1a   :  { %994 = shalt.err (!%p991_p9)  }
 0xc1b   :  { %942 = dma.vmem_to_hbm [thread:$0]  %s940_s21, 128, %s1473_s1, [#allocation9] }
 0xc1c   :  { %1005 = dma.done.wait [#allocation9], 128 }
 0xc1d   :  { %1006 = vsyncadd [#allocation9], 4294967168 }

</bundles_post_ra>
